<compile_context>
chip_gen: v7x
topology: tpu7x:2x2x1
jax: 0.10.0
libtpu: 0.0.40
codegen_flags: <defaults>
</compile_context>

<pallas_src>
import functools

import jax
import jax.numpy as jnp
from jax.experimental import pallas as pl
from jax.experimental.pallas import tpu as pltpu


HEAD_PAD = 128   # lane-dense padded output width for the fused QA heads
QKV_PAD = 128    # lane-dense padded output width for the fused QKV projection


# --------------------------------------------------------------------------- #
# Fused forward kernel (one batch element per grid step)
# --------------------------------------------------------------------------- #
def _fused_reader_kernel(x_ref, bias_ref, emb_g_ref, emb_b_ref,
                         wqkv_ref, bqkv_ref, wo_ref, bo_ref,
                         ln1_g_ref, ln1_b_ref,
                         wi_ref, bi_ref, wf_ref, bf_ref,
                         ln2_g_ref, ln2_b_ref,
                         head_w_ref, head_b_ref,
                         o_ref, *, num_layers, num_heads, hidden, eps):
    H = hidden
    Dh = H // num_heads

    def layer_norm(y, g, b):
        mean = jnp.mean(y, axis=-1, keepdims=True)
        c = y - mean
        var = jnp.mean(c * c, axis=-1, keepdims=True)
        return c * jax.lax.rsqrt(var + eps) * g + b

    # --- embedding LayerNorm ---
    x = layer_norm(x_ref[0], emb_g_ref[...], emb_b_ref[...])        # (S, H) f32
    bias = bias_ref[0]                                              # (1, S) additive mask

    # --- transformer encoder (post-LN, BERT style), fully VMEM-resident ---
    for l in range(num_layers):                                     # static unroll (L=2)
        # Attention block: one lane-dense fused QKV matmul (scale folded into Q).
        x_bf = x.astype(jnp.bfloat16)
        qkv = jnp.dot(x_bf, wqkv_ref[l],
                      preferred_element_type=jnp.float32) + bqkv_ref[l]   # (S, 128)
        ctxs = []
        for h in range(num_heads):                                  # static unroll (Hh=2)
            q = qkv[:, h * Dh:(h + 1) * Dh]                         # (S, Dh), pre-scaled
            k = qkv[:, H + h * Dh:H + (h + 1) * Dh]
            v = qkv[:, 2 * H + h * Dh:2 * H + (h + 1) * Dh]
            # scores: contract last dims directly (no materialized K transpose)
            s = jax.lax.dot_general(
                q.astype(jnp.bfloat16), k.astype(jnp.bfloat16),
                (((1,), (1,)), ((), ())),
                preferred_element_type=jnp.float32) + bias          # (S, S)
            s = s - jnp.max(s, axis=-1, keepdims=True)
            p = jnp.exp(s)
            p = p * pl.reciprocal(jnp.sum(p, axis=-1, keepdims=True), approx=True)
            ctxs.append(jnp.dot(p.astype(jnp.bfloat16), v.astype(jnp.bfloat16),
                                preferred_element_type=jnp.float32))      # (S, Dh)
        ctx = jnp.concatenate(ctxs, axis=-1)                        # (S, H) == merge_heads
        attn = jnp.dot(ctx.astype(jnp.bfloat16), wo_ref[l],
                       preferred_element_type=jnp.float32) + bo_ref[l]
        x = layer_norm(attn + x, ln1_g_ref[l], ln1_b_ref[l])

        # FFN block: matmul + bias + gelu + matmul + bias + residual + LN.
        hmid = jnp.dot(x.astype(jnp.bfloat16), wi_ref[l],
                       preferred_element_type=jnp.float32) + bi_ref[l]
        hmid = jax.nn.gelu(hmid)
        y = jnp.dot(hmid.astype(jnp.bfloat16), wf_ref[l],
                    preferred_element_type=jnp.float32) + bf_ref[l]
        x = layer_norm(y + x, ln2_g_ref[l], ln2_b_ref[l])

    # --- fused QA heads (lane-dense, zero-padded to 128 output lanes) ---
    logits = jnp.dot(x.astype(jnp.bfloat16), head_w_ref[...],
                     preferred_element_type=jnp.float32) + head_b_ref[...]
    o_ref[0] = logits.astype(o_ref.dtype)


# --------------------------------------------------------------------------- #
# Deterministic synthetic parameters (module __init__ shapes, small config)
# --------------------------------------------------------------------------- #
CFG = dict(vocab=100, hidden=32, heads=2, layers=2, intermediate=64,
           max_pos=64, type_vocab=2)


def init_params(key, cfg):
    H, I, Hh, L = cfg["hidden"], cfg["intermediate"], cfg["heads"], cfg["layers"]
    Dh = H // Hh
    scale = 0.02
    attn_scale = 1.0 / (Dh ** 0.5)

    def nrm(k, shape):
        return scale * jax.random.normal(k, shape, dtype=jnp.float32)

    keys = iter(jax.random.split(key, 64))
    params = {
        "word_emb": nrm(next(keys), (cfg["vocab"], H)),
        "pos_emb": nrm(next(keys), (cfg["max_pos"], H)),
        "type_emb": nrm(next(keys), (cfg["type_vocab"], H)),
        "emb_ln_g": jnp.ones((1, H), jnp.float32),
        "emb_ln_b": jnp.zeros((1, H), jnp.float32),
    }

    # ReaderModel heads: qa_outputs = Linear(H, 2), qa_classifier = Linear(H, 1).
    # Fused into one lane-dense zero-padded [H, 128] weight: cols 0/1 = start/end,
    # col 2 = classifier, cols 3.. = zero padding.
    qa_out_w = nrm(next(keys), (H, 2))
    qa_cls_w = nrm(next(keys), (H, 1))
    head_w = jnp.zeros((H, HEAD_PAD), jnp.float32)
    head_w = head_w.at[:, :3].set(jnp.concatenate([qa_out_w, qa_cls_w], axis=1))
    params["head_w"] = head_w.astype(jnp.bfloat16)
    params["head_b"] = jnp.zeros((1, HEAD_PAD), jnp.float32)

    # Per-layer encoder weights, stacked with a leading layer axis so the single
    # fused kernel can index them statically.
    wqkv_l, wo_l, wi_l, wf_l = [], [], [], []
    for _ in range(L):
        wq = nrm(next(keys), (H, H)) * attn_scale   # fold 1/sqrt(Dh) into Q weights
        wk = nrm(next(keys), (H, H))
        wv = nrm(next(keys), (H, H))
        wqkv = jnp.zeros((H, QKV_PAD), jnp.float32)
        wqkv = wqkv.at[:, :3 * H].set(jnp.concatenate([wq, wk, wv], axis=1))
        wqkv_l.append(wqkv)
        wo_l.append(nrm(next(keys), (H, H)))
        wi_l.append(nrm(next(keys), (H, I)))
        wf_l.append(nrm(next(keys), (I, H)))

    params.update({
        "wqkv": jnp.stack(wqkv_l).astype(jnp.bfloat16),        # (L, H, 128)
        "bqkv": jnp.zeros((L, 1, QKV_PAD), jnp.float32),        # QKV biases (scale-folded)
        "wo": jnp.stack(wo_l).astype(jnp.bfloat16),             # (L, H, H)
        "bo": jnp.zeros((L, 1, H), jnp.float32),
        "ln1_g": jnp.ones((L, 1, H), jnp.float32),
        "ln1_b": jnp.zeros((L, 1, H), jnp.float32),
        "wi": jnp.stack(wi_l).astype(jnp.bfloat16),             # (L, H, I)
        "bi": jnp.zeros((L, 1, I), jnp.float32),
        "wf": jnp.stack(wf_l).astype(jnp.bfloat16),             # (L, I, H)
        "bf": jnp.zeros((L, 1, H), jnp.float32),
        "ln2_g": jnp.ones((L, 1, H), jnp.float32),
        "ln2_b": jnp.zeros((L, 1, H), jnp.float32),
    })
    return params


# --------------------------------------------------------------------------- #
# ReaderModel.forward
# --------------------------------------------------------------------------- #
def reader_model_forward(params, input_ids, attention_mask, token_type_ids,
                         cfg=CFG, pooling_index=0):
    B, S = input_ids.shape
    H = cfg["hidden"]

    # --- embeddings (table gathers are plain-JAX glue) ---
    x = (params["word_emb"][input_ids]
         + params["pos_emb"][jnp.arange(S)][None, :, :]
         + params["type_emb"][token_type_ids])                    # (B, S, H) f32

    # additive mask bias precomputed once (not rebuilt per grid step)
    bias = ((1.0 - attention_mask.astype(jnp.float32)) * -1e9).reshape(B, 1, S)

    def full_spec(a):
        nd = a.ndim
        return pl.BlockSpec(a.shape, lambda b, _nd=nd: (0,) * _nd)

    weight_names = ["emb_ln_g", "emb_ln_b", "wqkv", "bqkv", "wo", "bo",
                    "ln1_g", "ln1_b", "wi", "bi", "wf", "bf",
                    "ln2_g", "ln2_b", "head_w", "head_b"]
    weights = [params[n] for n in weight_names]

    # --- ONE fused pallas_call: embedding LN + all layers + QA heads ---
    logits = pl.pallas_call(
        functools.partial(_fused_reader_kernel,
                          num_layers=cfg["layers"], num_heads=cfg["heads"],
                          hidden=H, eps=1e-12),
        out_shape=jax.ShapeDtypeStruct((B, S, HEAD_PAD), jnp.float32),
        grid=(B,),
        in_specs=[
            pl.BlockSpec((1, S, H), lambda b: (b, 0, 0)),         # embeddings sum
            pl.BlockSpec((1, 1, S), lambda b: (b, 0, 0)),         # additive mask bias
        ] + [full_spec(w) for w in weights],
        out_specs=pl.BlockSpec((1, S, HEAD_PAD), lambda b: (b, 0, 0)),
        compiler_params=pltpu.CompilerParams(
            dimension_semantics=("parallel",),                    # v7x: one batch per TC
            vmem_limit_bytes=32 * 1024 * 1024,
        ),
    )(x, bias, *weights)                                          # (B, S, 128)

    # --- ReaderModel heads: slice the lane-dense padded output in the wrapper ---
    start_logits = logits[..., 0]                                 # (B, S)
    end_logits = logits[..., 1]                                   # (B, S)
    classifier_logits = logits[:, pooling_index, 2]               # (B,)
    return classifier_logits, start_logits, end_logits


# --------------------------------------------------------------------------- #
# Demo
# --------------------------------------------------------------------------- #
if __name__ == "__main__":
    key = jax.random.PRNGKey(0)
    pkey, ikey = jax.random.split(key)

    params = init_params(pkey, CFG)

    B, S = 2, 8
    input_ids = jax.random.randint(ikey, (B, S), 0, CFG["vocab"], dtype=jnp.int32)
    attention_mask = jnp.array([[1, 1, 1, 1, 1, 1, 1, 1],
                                [1, 1, 1, 1, 1, 1, 0, 0]], dtype=jnp.int32)
    token_type_ids = jnp.array([[0, 0, 0, 0, 1, 1, 1, 1],
                                [0, 0, 0, 1, 1, 1, 1, 1]], dtype=jnp.int32)

    cls_logits, start_logits, end_logits = reader_model_forward(
        params, input_ids, attention_mask, token_type_ids)

    jax.block_until_ready((cls_logits, start_logits, end_logits))
    assert cls_logits.shape == (B,)
    assert start_logits.shape == (B, S)
    assert end_logits.shape == (B, S)
    print("KERNEL_OK")
</pallas_src>

<mosaic_0001>
module attributes {stable_mosaic.version = 11 : i64} {
  func.func @_fused_reader_kernel(%arg0: i32, %arg1: memref<1x8x32xf32, #tpu.memory_space<vmem>>, %arg2: memref<1x1x8xf32, #tpu.memory_space<vmem>>, %arg3: memref<1x32xf32, #tpu.memory_space<vmem>>, %arg4: memref<1x32xf32, #tpu.memory_space<vmem>>, %arg5: memref<2x32x128xbf16, #tpu.memory_space<vmem>>, %arg6: memref<2x1x128xf32, #tpu.memory_space<vmem>>, %arg7: memref<2x32x32xbf16, #tpu.memory_space<vmem>>, %arg8: memref<2x1x32xf32, #tpu.memory_space<vmem>>, %arg9: memref<2x1x32xf32, #tpu.memory_space<vmem>>, %arg10: memref<2x1x32xf32, #tpu.memory_space<vmem>>, %arg11: memref<2x32x64xbf16, #tpu.memory_space<vmem>>, %arg12: memref<2x1x64xf32, #tpu.memory_space<vmem>>, %arg13: memref<2x64x32xbf16, #tpu.memory_space<vmem>>, %arg14: memref<2x1x32xf32, #tpu.memory_space<vmem>>, %arg15: memref<2x1x32xf32, #tpu.memory_space<vmem>>, %arg16: memref<2x1x32xf32, #tpu.memory_space<vmem>>, %arg17: memref<32x128xbf16, #tpu.memory_space<vmem>>, %arg18: memref<1x128xf32, #tpu.memory_space<vmem>>, %arg19: memref<1x8x128xf32, #tpu.memory_space<vmem>>) attributes {dimension_semantics = [#tpu.dimension_semantics<parallel>], iteration_bounds = array<i64: 2>, scalar_prefetch = 0 : i64, scratch_operands = 0 : i64, tpu.core_type = #tpu.core_type<tc>, window_params = [{transform_indices = @transform_0, window_bounds = array<i64: 1, 8, 32>}, {transform_indices = @transform_1, window_bounds = array<i64: 1, 1, 8>}, {pipeline_mode = #tpu.pipeline_mode<synchronous>, transform_indices = @transform_2, window_bounds = array<i64: 1, 32>}, {pipeline_mode = #tpu.pipeline_mode<synchronous>, transform_indices = @transform_3, window_bounds = array<i64: 1, 32>}, {pipeline_mode = #tpu.pipeline_mode<synchronous>, transform_indices = @transform_4, window_bounds = array<i64: 2, 32, 128>}, {pipeline_mode = #tpu.pipeline_mode<synchronous>, transform_indices = @transform_5, window_bounds = array<i64: 2, 1, 128>}, {pipeline_mode = #tpu.pipeline_mode<synchronous>, transform_indices = @transform_6, window_bounds = array<i64: 2, 32, 32>}, {pipeline_mode = #tpu.pipeline_mode<synchronous>, transform_indices = @transform_7, window_bounds = array<i64: 2, 1, 32>}, {pipeline_mode = #tpu.pipeline_mode<synchronous>, transform_indices = @transform_8, window_bounds = array<i64: 2, 1, 32>}, {pipeline_mode = #tpu.pipeline_mode<synchronous>, transform_indices = @transform_9, window_bounds = array<i64: 2, 1, 32>}, {pipeline_mode = #tpu.pipeline_mode<synchronous>, transform_indices = @transform_10, window_bounds = array<i64: 2, 32, 64>}, {pipeline_mode = #tpu.pipeline_mode<synchronous>, transform_indices = @transform_11, window_bounds = array<i64: 2, 1, 64>}, {pipeline_mode = #tpu.pipeline_mode<synchronous>, transform_indices = @transform_12, window_bounds = array<i64: 2, 64, 32>}, {pipeline_mode = #tpu.pipeline_mode<synchronous>, transform_indices = @transform_13, window_bounds = array<i64: 2, 1, 32>}, {pipeline_mode = #tpu.pipeline_mode<synchronous>, transform_indices = @transform_14, window_bounds = array<i64: 2, 1, 32>}, {pipeline_mode = #tpu.pipeline_mode<synchronous>, transform_indices = @transform_15, window_bounds = array<i64: 2, 1, 32>}, {pipeline_mode = #tpu.pipeline_mode<synchronous>, transform_indices = @transform_16, window_bounds = array<i64: 32, 128>}, {pipeline_mode = #tpu.pipeline_mode<synchronous>, transform_indices = @transform_17, window_bounds = array<i64: 1, 128>}, {transform_indices = @transform_18, window_bounds = array<i64: 1, 8, 128>}]} {
    %c0 = arith.constant 0 : index
    %c0_0 = arith.constant 0 : index
    %c0_1 = arith.constant 0 : index
    %0 = vector.load %arg1[%c0, %c0_0, %c0_1] : memref<1x8x32xf32, #tpu.memory_space<vmem>>, vector<1x8x32xf32>
    %1 = vector.shape_cast %0 : vector<1x8x32xf32> to vector<8x32xf32>
    %c0_2 = arith.constant 0 : index
    %c0_3 = arith.constant 0 : index
    %2 = vector.load %arg3[%c0_2, %c0_3] : memref<1x32xf32, #tpu.memory_space<vmem>>, vector<1x32xf32>
    %c0_4 = arith.constant 0 : index
    %c0_5 = arith.constant 0 : index
    %3 = vector.load %arg4[%c0_4, %c0_5] : memref<1x32xf32, #tpu.memory_space<vmem>>, vector<1x32xf32>
    %cst = arith.constant dense<0.000000e+00> : vector<8xf32>
    %4 = vector.multi_reduction <add>, %1, %cst [1] : vector<8x32xf32> to vector<8xf32>
    %5 = vector.shape_cast %4 : vector<8xf32> to vector<8x1xf32>
    %cst_6 = arith.constant 3.200000e+01 : f32
    %6 = vector.broadcast %cst_6 : f32 to vector<8x1xf32>
    %7 = arith.divf %5, %6 : vector<8x1xf32>
    %8 = vector.broadcast %7 : vector<8x1xf32> to vector<8x32xf32>
    %9 = arith.subf %1, %8 : vector<8x32xf32>
    %10 = arith.mulf %9, %9 : vector<8x32xf32>
    %cst_7 = arith.constant dense<0.000000e+00> : vector<8xf32>
    %11 = vector.multi_reduction <add>, %10, %cst_7 [1] : vector<8x32xf32> to vector<8xf32>
    %12 = vector.shape_cast %11 : vector<8xf32> to vector<8x1xf32>
    %cst_8 = arith.constant 3.200000e+01 : f32
    %13 = vector.broadcast %cst_8 : f32 to vector<8x1xf32>
    %14 = arith.divf %12, %13 : vector<8x1xf32>
    %cst_9 = arith.constant 9.99999996E-13 : f32
    %15 = vector.broadcast %cst_9 : f32 to vector<8x1xf32>
    %16 = arith.addf %14, %15 : vector<8x1xf32>
    %17 = math.rsqrt %16 : vector<8x1xf32>
    %18 = vector.broadcast %17 : vector<8x1xf32> to vector<8x32xf32>
    %19 = arith.mulf %9, %18 : vector<8x32xf32>
    %20 = vector.broadcast %2 : vector<1x32xf32> to vector<8x32xf32>
    %21 = arith.mulf %19, %20 : vector<8x32xf32>
    %22 = vector.broadcast %3 : vector<1x32xf32> to vector<8x32xf32>
    %23 = arith.addf %21, %22 : vector<8x32xf32>
    %c0_10 = arith.constant 0 : index
    %c0_11 = arith.constant 0 : index
    %c0_12 = arith.constant 0 : index
    %24 = vector.load %arg2[%c0_10, %c0_11, %c0_12] : memref<1x1x8xf32, #tpu.memory_space<vmem>>, vector<1x1x8xf32>
    %25 = vector.shape_cast %24 : vector<1x1x8xf32> to vector<1x8xf32>
    %26 = arith.truncf %23 : vector<8x32xf32> to vector<8x32xbf16>
    %c0_13 = arith.constant 0 : index
    %c0_14 = arith.constant 0 : index
    %c0_15 = arith.constant 0 : index
    %27 = vector.load %arg5[%c0_13, %c0_14, %c0_15] : memref<2x32x128xbf16, #tpu.memory_space<vmem>>, vector<1x32x128xbf16>
    %28 = vector.shape_cast %27 : vector<1x32x128xbf16> to vector<32x128xbf16>
    %cst_16 = arith.constant dense<0.000000e+00> : vector<8x128xf32>
    %29 = tpu.matmul %26, %28, %cst_16 {dimension_numbers = #tpu.dot_dimension_numbers<[1], [0], [0], [1], [0, 0, 1, 1], [], []>} : vector<8x32xbf16>, vector<32x128xbf16>, vector<8x128xf32> -> vector<8x128xf32>
    %c0_17 = arith.constant 0 : index
    %c0_18 = arith.constant 0 : index
    %c0_19 = arith.constant 0 : index
    %30 = vector.load %arg6[%c0_17, %c0_18, %c0_19] : memref<2x1x128xf32, #tpu.memory_space<vmem>>, vector<1x1x128xf32>
    %31 = vector.shape_cast %30 : vector<1x1x128xf32> to vector<1x128xf32>
    %32 = vector.broadcast %31 : vector<1x128xf32> to vector<8x128xf32>
    %33 = arith.addf %29, %32 : vector<8x128xf32>
    %34 = vector.extract_strided_slice %33 {offsets = [0, 0], sizes = [8, 16], strides = [1, 1]} : vector<8x128xf32> to vector<8x16xf32>
    %35 = vector.extract_strided_slice %33 {offsets = [0, 32], sizes = [8, 16], strides = [1, 1]} : vector<8x128xf32> to vector<8x16xf32>
    %36 = vector.extract_strided_slice %33 {offsets = [0, 64], sizes = [8, 16], strides = [1, 1]} : vector<8x128xf32> to vector<8x16xf32>
    %37 = arith.truncf %34 : vector<8x16xf32> to vector<8x16xbf16>
    %38 = arith.truncf %35 : vector<8x16xf32> to vector<8x16xbf16>
    %cst_20 = arith.constant dense<0.000000e+00> : vector<8x8xf32>
    %39 = tpu.matmul %37, %38, %cst_20 {dimension_numbers = #tpu.dot_dimension_numbers<[1], [1], [0], [0], [0, 0, 1, 0], [], []>} : vector<8x16xbf16>, vector<8x16xbf16>, vector<8x8xf32> -> vector<8x8xf32>
    %40 = vector.broadcast %25 : vector<1x8xf32> to vector<8x8xf32>
    %41 = arith.addf %39, %40 : vector<8x8xf32>
    %cst_21 = arith.constant dense<0xFF800000> : vector<8xf32>
    %42 = vector.multi_reduction <maximumf>, %41, %cst_21 [1] : vector<8x8xf32> to vector<8xf32>
    %43 = vector.shape_cast %42 : vector<8xf32> to vector<8x1xf32>
    %44 = vector.broadcast %43 : vector<8x1xf32> to vector<8x8xf32>
    %45 = arith.subf %41, %44 : vector<8x8xf32>
    %46 = math.exp %45 : vector<8x8xf32>
    %cst_22 = arith.constant dense<0.000000e+00> : vector<8xf32>
    %47 = vector.multi_reduction <add>, %46, %cst_22 [1] : vector<8x8xf32> to vector<8xf32>
    %48 = vector.shape_cast %47 : vector<8xf32> to vector<8x1xf32>
    %49 = tpu.reciprocal %48 {approx = true} : vector<8x1xf32> -> vector<8x1xf32>
    %50 = vector.broadcast %49 : vector<8x1xf32> to vector<8x8xf32>
    %51 = arith.mulf %46, %50 : vector<8x8xf32>
    %52 = arith.truncf %51 : vector<8x8xf32> to vector<8x8xbf16>
    %53 = arith.truncf %36 : vector<8x16xf32> to vector<8x16xbf16>
    %cst_23 = arith.constant dense<0.000000e+00> : vector<8x16xf32>
    %54 = tpu.matmul %52, %53, %cst_23 {dimension_numbers = #tpu.dot_dimension_numbers<[1], [0], [0], [1], [0, 0, 1, 1], [], []>} : vector<8x8xbf16>, vector<8x16xbf16>, vector<8x16xf32> -> vector<8x16xf32>
    %55 = vector.extract_strided_slice %33 {offsets = [0, 16], sizes = [8, 16], strides = [1, 1]} : vector<8x128xf32> to vector<8x16xf32>
    %56 = vector.extract_strided_slice %33 {offsets = [0, 48], sizes = [8, 16], strides = [1, 1]} : vector<8x128xf32> to vector<8x16xf32>
    %57 = vector.extract_strided_slice %33 {offsets = [0, 80], sizes = [8, 16], strides = [1, 1]} : vector<8x128xf32> to vector<8x16xf32>
    %58 = arith.truncf %55 : vector<8x16xf32> to vector<8x16xbf16>
    %59 = arith.truncf %56 : vector<8x16xf32> to vector<8x16xbf16>
    %cst_24 = arith.constant dense<0.000000e+00> : vector<8x8xf32>
    %60 = tpu.matmul %58, %59, %cst_24 {dimension_numbers = #tpu.dot_dimension_numbers<[1], [1], [0], [0], [0, 0, 1, 0], [], []>} : vector<8x16xbf16>, vector<8x16xbf16>, vector<8x8xf32> -> vector<8x8xf32>
    %61 = vector.broadcast %25 : vector<1x8xf32> to vector<8x8xf32>
    %62 = arith.addf %60, %61 : vector<8x8xf32>
    %cst_25 = arith.constant dense<0xFF800000> : vector<8xf32>
    %63 = vector.multi_reduction <maximumf>, %62, %cst_25 [1] : vector<8x8xf32> to vector<8xf32>
    %64 = vector.shape_cast %63 : vector<8xf32> to vector<8x1xf32>
    %65 = vector.broadcast %64 : vector<8x1xf32> to vector<8x8xf32>
    %66 = arith.subf %62, %65 : vector<8x8xf32>
    %67 = math.exp %66 : vector<8x8xf32>
    %cst_26 = arith.constant dense<0.000000e+00> : vector<8xf32>
    %68 = vector.multi_reduction <add>, %67, %cst_26 [1] : vector<8x8xf32> to vector<8xf32>
    %69 = vector.shape_cast %68 : vector<8xf32> to vector<8x1xf32>
    %70 = tpu.reciprocal %69 {approx = true} : vector<8x1xf32> -> vector<8x1xf32>
    %71 = vector.broadcast %70 : vector<8x1xf32> to vector<8x8xf32>
    %72 = arith.mulf %67, %71 : vector<8x8xf32>
    %73 = arith.truncf %72 : vector<8x8xf32> to vector<8x8xbf16>
    %74 = arith.truncf %57 : vector<8x16xf32> to vector<8x16xbf16>
    %cst_27 = arith.constant dense<0.000000e+00> : vector<8x16xf32>
    %75 = tpu.matmul %73, %74, %cst_27 {dimension_numbers = #tpu.dot_dimension_numbers<[1], [0], [0], [1], [0, 0, 1, 1], [], []>} : vector<8x8xbf16>, vector<8x16xbf16>, vector<8x16xf32> -> vector<8x16xf32>
    %76 = tpu.concatenate %54, %75 in 1 : vector<8x16xf32>, vector<8x16xf32> -> vector<8x32xf32>
    %77 = arith.truncf %76 : vector<8x32xf32> to vector<8x32xbf16>
    %c0_28 = arith.constant 0 : index
    %c0_29 = arith.constant 0 : index
    %c0_30 = arith.constant 0 : index
    %78 = vector.load %arg7[%c0_28, %c0_29, %c0_30] : memref<2x32x32xbf16, #tpu.memory_space<vmem>>, vector<1x32x32xbf16>
    %79 = vector.shape_cast %78 : vector<1x32x32xbf16> to vector<32x32xbf16>
    %cst_31 = arith.constant dense<0.000000e+00> : vector<8x32xf32>
    %80 = tpu.matmul %77, %79, %cst_31 {dimension_numbers = #tpu.dot_dimension_numbers<[1], [0], [0], [1], [0, 0, 1, 1], [], []>} : vector<8x32xbf16>, vector<32x32xbf16>, vector<8x32xf32> -> vector<8x32xf32>
    %c0_32 = arith.constant 0 : index
    %c0_33 = arith.constant 0 : index
    %c0_34 = arith.constant 0 : index
    %81 = vector.load %arg8[%c0_32, %c0_33, %c0_34] : memref<2x1x32xf32, #tpu.memory_space<vmem>>, vector<1x1x32xf32>
    %82 = vector.shape_cast %81 : vector<1x1x32xf32> to vector<1x32xf32>
    %83 = vector.broadcast %82 : vector<1x32xf32> to vector<8x32xf32>
    %84 = arith.addf %80, %83 : vector<8x32xf32>
    %85 = arith.addf %84, %23 : vector<8x32xf32>
    %c0_35 = arith.constant 0 : index
    %c0_36 = arith.constant 0 : index
    %c0_37 = arith.constant 0 : index
    %86 = vector.load %arg9[%c0_35, %c0_36, %c0_37] : memref<2x1x32xf32, #tpu.memory_space<vmem>>, vector<1x1x32xf32>
    %87 = vector.shape_cast %86 : vector<1x1x32xf32> to vector<1x32xf32>
    %c0_38 = arith.constant 0 : index
    %c0_39 = arith.constant 0 : index
    %c0_40 = arith.constant 0 : index
    %88 = vector.load %arg10[%c0_38, %c0_39, %c0_40] : memref<2x1x32xf32, #tpu.memory_space<vmem>>, vector<1x1x32xf32>
    %89 = vector.shape_cast %88 : vector<1x1x32xf32> to vector<1x32xf32>
    %cst_41 = arith.constant dense<0.000000e+00> : vector<8xf32>
    %90 = vector.multi_reduction <add>, %85, %cst_41 [1] : vector<8x32xf32> to vector<8xf32>
    %91 = vector.shape_cast %90 : vector<8xf32> to vector<8x1xf32>
    %cst_42 = arith.constant 3.200000e+01 : f32
    %92 = vector.broadcast %cst_42 : f32 to vector<8x1xf32>
    %93 = arith.divf %91, %92 : vector<8x1xf32>
    %94 = vector.broadcast %93 : vector<8x1xf32> to vector<8x32xf32>
    %95 = arith.subf %85, %94 : vector<8x32xf32>
    %96 = arith.mulf %95, %95 : vector<8x32xf32>
    %cst_43 = arith.constant dense<0.000000e+00> : vector<8xf32>
    %97 = vector.multi_reduction <add>, %96, %cst_43 [1] : vector<8x32xf32> to vector<8xf32>
    %98 = vector.shape_cast %97 : vector<8xf32> to vector<8x1xf32>
    %cst_44 = arith.constant 3.200000e+01 : f32
    %99 = vector.broadcast %cst_44 : f32 to vector<8x1xf32>
    %100 = arith.divf %98, %99 : vector<8x1xf32>
    %cst_45 = arith.constant 9.99999996E-13 : f32
    %101 = vector.broadcast %cst_45 : f32 to vector<8x1xf32>
    %102 = arith.addf %100, %101 : vector<8x1xf32>
    %103 = math.rsqrt %102 : vector<8x1xf32>
    %104 = vector.broadcast %103 : vector<8x1xf32> to vector<8x32xf32>
    %105 = arith.mulf %95, %104 : vector<8x32xf32>
    %106 = vector.broadcast %87 : vector<1x32xf32> to vector<8x32xf32>
    %107 = arith.mulf %105, %106 : vector<8x32xf32>
    %108 = vector.broadcast %89 : vector<1x32xf32> to vector<8x32xf32>
    %109 = arith.addf %107, %108 : vector<8x32xf32>
    %110 = arith.truncf %109 : vector<8x32xf32> to vector<8x32xbf16>
    %c0_46 = arith.constant 0 : index
    %c0_47 = arith.constant 0 : index
    %c0_48 = arith.constant 0 : index
    %111 = vector.load %arg11[%c0_46, %c0_47, %c0_48] : memref<2x32x64xbf16, #tpu.memory_space<vmem>>, vector<1x32x64xbf16>
    %112 = vector.shape_cast %111 : vector<1x32x64xbf16> to vector<32x64xbf16>
    %cst_49 = arith.constant dense<0.000000e+00> : vector<8x64xf32>
    %113 = tpu.matmul %110, %112, %cst_49 {dimension_numbers = #tpu.dot_dimension_numbers<[1], [0], [0], [1], [0, 0, 1, 1], [], []>} : vector<8x32xbf16>, vector<32x64xbf16>, vector<8x64xf32> -> vector<8x64xf32>
    %c0_50 = arith.constant 0 : index
    %c0_51 = arith.constant 0 : index
    %c0_52 = arith.constant 0 : index
    %114 = vector.load %arg12[%c0_50, %c0_51, %c0_52] : memref<2x1x64xf32, #tpu.memory_space<vmem>>, vector<1x1x64xf32>
    %115 = vector.shape_cast %114 : vector<1x1x64xf32> to vector<1x64xf32>
    %116 = vector.broadcast %115 : vector<1x64xf32> to vector<8x64xf32>
    %117 = arith.addf %113, %116 : vector<8x64xf32>
    %118 = arith.mulf %117, %117 : vector<8x64xf32>
    %119 = arith.mulf %117, %118 : vector<8x64xf32>
    %cst_53 = arith.constant 4.471500e-02 : f32
    %120 = vector.broadcast %cst_53 : f32 to vector<8x64xf32>
    %121 = arith.mulf %120, %119 : vector<8x64xf32>
    %122 = arith.addf %117, %121 : vector<8x64xf32>
    %cst_54 = arith.constant 0.797884583 : f32
    %123 = vector.broadcast %cst_54 : f32 to vector<8x64xf32>
    %124 = arith.mulf %123, %122 : vector<8x64xf32>
    %125 = math.tanh %124 : vector<8x64xf32>
    %cst_55 = arith.constant 1.000000e+00 : f32
    %126 = vector.broadcast %cst_55 : f32 to vector<8x64xf32>
    %127 = arith.addf %126, %125 : vector<8x64xf32>
    %cst_56 = arith.constant 5.000000e-01 : f32
    %128 = vector.broadcast %cst_56 : f32 to vector<8x64xf32>
    %129 = arith.mulf %128, %127 : vector<8x64xf32>
    %130 = arith.mulf %117, %129 : vector<8x64xf32>
    %131 = arith.truncf %130 : vector<8x64xf32> to vector<8x64xbf16>
    %c0_57 = arith.constant 0 : index
    %c0_58 = arith.constant 0 : index
    %c0_59 = arith.constant 0 : index
    %132 = vector.load %arg13[%c0_57, %c0_58, %c0_59] : memref<2x64x32xbf16, #tpu.memory_space<vmem>>, vector<1x64x32xbf16>
    %133 = vector.shape_cast %132 : vector<1x64x32xbf16> to vector<64x32xbf16>
    %cst_60 = arith.constant dense<0.000000e+00> : vector<8x32xf32>
    %134 = tpu.matmul %131, %133, %cst_60 {dimension_numbers = #tpu.dot_dimension_numbers<[1], [0], [0], [1], [0, 0, 1, 1], [], []>} : vector<8x64xbf16>, vector<64x32xbf16>, vector<8x32xf32> -> vector<8x32xf32>
    %c0_61 = arith.constant 0 : index
    %c0_62 = arith.constant 0 : index
    %c0_63 = arith.constant 0 : index
    %135 = vector.load %arg14[%c0_61, %c0_62, %c0_63] : memref<2x1x32xf32, #tpu.memory_space<vmem>>, vector<1x1x32xf32>
    %136 = vector.shape_cast %135 : vector<1x1x32xf32> to vector<1x32xf32>
    %137 = vector.broadcast %136 : vector<1x32xf32> to vector<8x32xf32>
    %138 = arith.addf %134, %137 : vector<8x32xf32>
    %139 = arith.addf %138, %109 : vector<8x32xf32>
    %c0_64 = arith.constant 0 : index
    %c0_65 = arith.constant 0 : index
    %c0_66 = arith.constant 0 : index
    %140 = vector.load %arg15[%c0_64, %c0_65, %c0_66] : memref<2x1x32xf32, #tpu.memory_space<vmem>>, vector<1x1x32xf32>
    %141 = vector.shape_cast %140 : vector<1x1x32xf32> to vector<1x32xf32>
    %c0_67 = arith.constant 0 : index
    %c0_68 = arith.constant 0 : index
    %c0_69 = arith.constant 0 : index
    %142 = vector.load %arg16[%c0_67, %c0_68, %c0_69] : memref<2x1x32xf32, #tpu.memory_space<vmem>>, vector<1x1x32xf32>
    %143 = vector.shape_cast %142 : vector<1x1x32xf32> to vector<1x32xf32>
    %cst_70 = arith.constant dense<0.000000e+00> : vector<8xf32>
    %144 = vector.multi_reduction <add>, %139, %cst_70 [1] : vector<8x32xf32> to vector<8xf32>
    %145 = vector.shape_cast %144 : vector<8xf32> to vector<8x1xf32>
    %cst_71 = arith.constant 3.200000e+01 : f32
    %146 = vector.broadcast %cst_71 : f32 to vector<8x1xf32>
    %147 = arith.divf %145, %146 : vector<8x1xf32>
    %148 = vector.broadcast %147 : vector<8x1xf32> to vector<8x32xf32>
    %149 = arith.subf %139, %148 : vector<8x32xf32>
    %150 = arith.mulf %149, %149 : vector<8x32xf32>
    %cst_72 = arith.constant dense<0.000000e+00> : vector<8xf32>
    %151 = vector.multi_reduction <add>, %150, %cst_72 [1] : vector<8x32xf32> to vector<8xf32>
    %152 = vector.shape_cast %151 : vector<8xf32> to vector<8x1xf32>
    %cst_73 = arith.constant 3.200000e+01 : f32
    %153 = vector.broadcast %cst_73 : f32 to vector<8x1xf32>
    %154 = arith.divf %152, %153 : vector<8x1xf32>
    %cst_74 = arith.constant 9.99999996E-13 : f32
    %155 = vector.broadcast %cst_74 : f32 to vector<8x1xf32>
    %156 = arith.addf %154, %155 : vector<8x1xf32>
    %157 = math.rsqrt %156 : vector<8x1xf32>
    %158 = vector.broadcast %157 : vector<8x1xf32> to vector<8x32xf32>
    %159 = arith.mulf %149, %158 : vector<8x32xf32>
    %160 = vector.broadcast %141 : vector<1x32xf32> to vector<8x32xf32>
    %161 = arith.mulf %159, %160 : vector<8x32xf32>
    %162 = vector.broadcast %143 : vector<1x32xf32> to vector<8x32xf32>
    %163 = arith.addf %161, %162 : vector<8x32xf32>
    %164 = arith.truncf %163 : vector<8x32xf32> to vector<8x32xbf16>
    %c1 = arith.constant 1 : index
    %c0_75 = arith.constant 0 : index
    %c0_76 = arith.constant 0 : index
    %165 = vector.load %arg5[%c1, %c0_75, %c0_76] : memref<2x32x128xbf16, #tpu.memory_space<vmem>>, vector<1x32x128xbf16>
    %166 = vector.shape_cast %165 : vector<1x32x128xbf16> to vector<32x128xbf16>
    %cst_77 = arith.constant dense<0.000000e+00> : vector<8x128xf32>
    %167 = tpu.matmul %164, %166, %cst_77 {dimension_numbers = #tpu.dot_dimension_numbers<[1], [0], [0], [1], [0, 0, 1, 1], [], []>} : vector<8x32xbf16>, vector<32x128xbf16>, vector<8x128xf32> -> vector<8x128xf32>
    %c1_78 = arith.constant 1 : index
    %c0_79 = arith.constant 0 : index
    %c0_80 = arith.constant 0 : index
    %168 = vector.load %arg6[%c1_78, %c0_79, %c0_80] : memref<2x1x128xf32, #tpu.memory_space<vmem>>, vector<1x1x128xf32>
    %169 = vector.shape_cast %168 : vector<1x1x128xf32> to vector<1x128xf32>
    %170 = vector.broadcast %169 : vector<1x128xf32> to vector<8x128xf32>
    %171 = arith.addf %167, %170 : vector<8x128xf32>
    %172 = vector.extract_strided_slice %171 {offsets = [0, 0], sizes = [8, 16], strides = [1, 1]} : vector<8x128xf32> to vector<8x16xf32>
    %173 = vector.extract_strided_slice %171 {offsets = [0, 32], sizes = [8, 16], strides = [1, 1]} : vector<8x128xf32> to vector<8x16xf32>
    %174 = vector.extract_strided_slice %171 {offsets = [0, 64], sizes = [8, 16], strides = [1, 1]} : vector<8x128xf32> to vector<8x16xf32>
    %175 = arith.truncf %172 : vector<8x16xf32> to vector<8x16xbf16>
    %176 = arith.truncf %173 : vector<8x16xf32> to vector<8x16xbf16>
    %cst_81 = arith.constant dense<0.000000e+00> : vector<8x8xf32>
    %177 = tpu.matmul %175, %176, %cst_81 {dimension_numbers = #tpu.dot_dimension_numbers<[1], [1], [0], [0], [0, 0, 1, 0], [], []>} : vector<8x16xbf16>, vector<8x16xbf16>, vector<8x8xf32> -> vector<8x8xf32>
    %178 = vector.broadcast %25 : vector<1x8xf32> to vector<8x8xf32>
    %179 = arith.addf %177, %178 : vector<8x8xf32>
    %cst_82 = arith.constant dense<0xFF800000> : vector<8xf32>
    %180 = vector.multi_reduction <maximumf>, %179, %cst_82 [1] : vector<8x8xf32> to vector<8xf32>
    %181 = vector.shape_cast %180 : vector<8xf32> to vector<8x1xf32>
    %182 = vector.broadcast %181 : vector<8x1xf32> to vector<8x8xf32>
    %183 = arith.subf %179, %182 : vector<8x8xf32>
    %184 = math.exp %183 : vector<8x8xf32>
    %cst_83 = arith.constant dense<0.000000e+00> : vector<8xf32>
    %185 = vector.multi_reduction <add>, %184, %cst_83 [1] : vector<8x8xf32> to vector<8xf32>
    %186 = vector.shape_cast %185 : vector<8xf32> to vector<8x1xf32>
    %187 = tpu.reciprocal %186 {approx = true} : vector<8x1xf32> -> vector<8x1xf32>
    %188 = vector.broadcast %187 : vector<8x1xf32> to vector<8x8xf32>
    %189 = arith.mulf %184, %188 : vector<8x8xf32>
    %190 = arith.truncf %189 : vector<8x8xf32> to vector<8x8xbf16>
    %191 = arith.truncf %174 : vector<8x16xf32> to vector<8x16xbf16>
    %cst_84 = arith.constant dense<0.000000e+00> : vector<8x16xf32>
    %192 = tpu.matmul %190, %191, %cst_84 {dimension_numbers = #tpu.dot_dimension_numbers<[1], [0], [0], [1], [0, 0, 1, 1], [], []>} : vector<8x8xbf16>, vector<8x16xbf16>, vector<8x16xf32> -> vector<8x16xf32>
    %193 = vector.extract_strided_slice %171 {offsets = [0, 16], sizes = [8, 16], strides = [1, 1]} : vector<8x128xf32> to vector<8x16xf32>
    %194 = vector.extract_strided_slice %171 {offsets = [0, 48], sizes = [8, 16], strides = [1, 1]} : vector<8x128xf32> to vector<8x16xf32>
    %195 = vector.extract_strided_slice %171 {offsets = [0, 80], sizes = [8, 16], strides = [1, 1]} : vector<8x128xf32> to vector<8x16xf32>
    %196 = arith.truncf %193 : vector<8x16xf32> to vector<8x16xbf16>
    %197 = arith.truncf %194 : vector<8x16xf32> to vector<8x16xbf16>
    %cst_85 = arith.constant dense<0.000000e+00> : vector<8x8xf32>
    %198 = tpu.matmul %196, %197, %cst_85 {dimension_numbers = #tpu.dot_dimension_numbers<[1], [1], [0], [0], [0, 0, 1, 0], [], []>} : vector<8x16xbf16>, vector<8x16xbf16>, vector<8x8xf32> -> vector<8x8xf32>
    %199 = vector.broadcast %25 : vector<1x8xf32> to vector<8x8xf32>
    %200 = arith.addf %198, %199 : vector<8x8xf32>
    %cst_86 = arith.constant dense<0xFF800000> : vector<8xf32>
    %201 = vector.multi_reduction <maximumf>, %200, %cst_86 [1] : vector<8x8xf32> to vector<8xf32>
    %202 = vector.shape_cast %201 : vector<8xf32> to vector<8x1xf32>
    %203 = vector.broadcast %202 : vector<8x1xf32> to vector<8x8xf32>
    %204 = arith.subf %200, %203 : vector<8x8xf32>
    %205 = math.exp %204 : vector<8x8xf32>
    %cst_87 = arith.constant dense<0.000000e+00> : vector<8xf32>
    %206 = vector.multi_reduction <add>, %205, %cst_87 [1] : vector<8x8xf32> to vector<8xf32>
    %207 = vector.shape_cast %206 : vector<8xf32> to vector<8x1xf32>
    %208 = tpu.reciprocal %207 {approx = true} : vector<8x1xf32> -> vector<8x1xf32>
    %209 = vector.broadcast %208 : vector<8x1xf32> to vector<8x8xf32>
    %210 = arith.mulf %205, %209 : vector<8x8xf32>
    %211 = arith.truncf %210 : vector<8x8xf32> to vector<8x8xbf16>
    %212 = arith.truncf %195 : vector<8x16xf32> to vector<8x16xbf16>
    %cst_88 = arith.constant dense<0.000000e+00> : vector<8x16xf32>
    %213 = tpu.matmul %211, %212, %cst_88 {dimension_numbers = #tpu.dot_dimension_numbers<[1], [0], [0], [1], [0, 0, 1, 1], [], []>} : vector<8x8xbf16>, vector<8x16xbf16>, vector<8x16xf32> -> vector<8x16xf32>
    %214 = tpu.concatenate %192, %213 in 1 : vector<8x16xf32>, vector<8x16xf32> -> vector<8x32xf32>
    %215 = arith.truncf %214 : vector<8x32xf32> to vector<8x32xbf16>
    %c1_89 = arith.constant 1 : index
    %c0_90 = arith.constant 0 : index
    %c0_91 = arith.constant 0 : index
    %216 = vector.load %arg7[%c1_89, %c0_90, %c0_91] : memref<2x32x32xbf16, #tpu.memory_space<vmem>>, vector<1x32x32xbf16>
    %217 = vector.shape_cast %216 : vector<1x32x32xbf16> to vector<32x32xbf16>
    %cst_92 = arith.constant dense<0.000000e+00> : vector<8x32xf32>
    %218 = tpu.matmul %215, %217, %cst_92 {dimension_numbers = #tpu.dot_dimension_numbers<[1], [0], [0], [1], [0, 0, 1, 1], [], []>} : vector<8x32xbf16>, vector<32x32xbf16>, vector<8x32xf32> -> vector<8x32xf32>
    %c1_93 = arith.constant 1 : index
    %c0_94 = arith.constant 0 : index
    %c0_95 = arith.constant 0 : index
    %219 = vector.load %arg8[%c1_93, %c0_94, %c0_95] : memref<2x1x32xf32, #tpu.memory_space<vmem>>, vector<1x1x32xf32>
    %220 = vector.shape_cast %219 : vector<1x1x32xf32> to vector<1x32xf32>
    %221 = vector.broadcast %220 : vector<1x32xf32> to vector<8x32xf32>
    %222 = arith.addf %218, %221 : vector<8x32xf32>
    %223 = arith.addf %222, %163 : vector<8x32xf32>
    %c1_96 = arith.constant 1 : index
    %c0_97 = arith.constant 0 : index
    %c0_98 = arith.constant 0 : index
    %224 = vector.load %arg9[%c1_96, %c0_97, %c0_98] : memref<2x1x32xf32, #tpu.memory_space<vmem>>, vector<1x1x32xf32>
    %225 = vector.shape_cast %224 : vector<1x1x32xf32> to vector<1x32xf32>
    %c1_99 = arith.constant 1 : index
    %c0_100 = arith.constant 0 : index
    %c0_101 = arith.constant 0 : index
    %226 = vector.load %arg10[%c1_99, %c0_100, %c0_101] : memref<2x1x32xf32, #tpu.memory_space<vmem>>, vector<1x1x32xf32>
    %227 = vector.shape_cast %226 : vector<1x1x32xf32> to vector<1x32xf32>
    %cst_102 = arith.constant dense<0.000000e+00> : vector<8xf32>
    %228 = vector.multi_reduction <add>, %223, %cst_102 [1] : vector<8x32xf32> to vector<8xf32>
    %229 = vector.shape_cast %228 : vector<8xf32> to vector<8x1xf32>
    %cst_103 = arith.constant 3.200000e+01 : f32
    %230 = vector.broadcast %cst_103 : f32 to vector<8x1xf32>
    %231 = arith.divf %229, %230 : vector<8x1xf32>
    %232 = vector.broadcast %231 : vector<8x1xf32> to vector<8x32xf32>
    %233 = arith.subf %223, %232 : vector<8x32xf32>
    %234 = arith.mulf %233, %233 : vector<8x32xf32>
    %cst_104 = arith.constant dense<0.000000e+00> : vector<8xf32>
    %235 = vector.multi_reduction <add>, %234, %cst_104 [1] : vector<8x32xf32> to vector<8xf32>
    %236 = vector.shape_cast %235 : vector<8xf32> to vector<8x1xf32>
    %cst_105 = arith.constant 3.200000e+01 : f32
    %237 = vector.broadcast %cst_105 : f32 to vector<8x1xf32>
    %238 = arith.divf %236, %237 : vector<8x1xf32>
    %cst_106 = arith.constant 9.99999996E-13 : f32
    %239 = vector.broadcast %cst_106 : f32 to vector<8x1xf32>
    %240 = arith.addf %238, %239 : vector<8x1xf32>
    %241 = math.rsqrt %240 : vector<8x1xf32>
    %242 = vector.broadcast %241 : vector<8x1xf32> to vector<8x32xf32>
    %243 = arith.mulf %233, %242 : vector<8x32xf32>
    %244 = vector.broadcast %225 : vector<1x32xf32> to vector<8x32xf32>
    %245 = arith.mulf %243, %244 : vector<8x32xf32>
    %246 = vector.broadcast %227 : vector<1x32xf32> to vector<8x32xf32>
    %247 = arith.addf %245, %246 : vector<8x32xf32>
    %248 = arith.truncf %247 : vector<8x32xf32> to vector<8x32xbf16>
    %c1_107 = arith.constant 1 : index
    %c0_108 = arith.constant 0 : index
    %c0_109 = arith.constant 0 : index
    %249 = vector.load %arg11[%c1_107, %c0_108, %c0_109] : memref<2x32x64xbf16, #tpu.memory_space<vmem>>, vector<1x32x64xbf16>
    %250 = vector.shape_cast %249 : vector<1x32x64xbf16> to vector<32x64xbf16>
    %cst_110 = arith.constant dense<0.000000e+00> : vector<8x64xf32>
    %251 = tpu.matmul %248, %250, %cst_110 {dimension_numbers = #tpu.dot_dimension_numbers<[1], [0], [0], [1], [0, 0, 1, 1], [], []>} : vector<8x32xbf16>, vector<32x64xbf16>, vector<8x64xf32> -> vector<8x64xf32>
    %c1_111 = arith.constant 1 : index
    %c0_112 = arith.constant 0 : index
    %c0_113 = arith.constant 0 : index
    %252 = vector.load %arg12[%c1_111, %c0_112, %c0_113] : memref<2x1x64xf32, #tpu.memory_space<vmem>>, vector<1x1x64xf32>
    %253 = vector.shape_cast %252 : vector<1x1x64xf32> to vector<1x64xf32>
    %254 = vector.broadcast %253 : vector<1x64xf32> to vector<8x64xf32>
    %255 = arith.addf %251, %254 : vector<8x64xf32>
    %256 = arith.mulf %255, %255 : vector<8x64xf32>
    %257 = arith.mulf %255, %256 : vector<8x64xf32>
    %cst_114 = arith.constant 4.471500e-02 : f32
    %258 = vector.broadcast %cst_114 : f32 to vector<8x64xf32>
    %259 = arith.mulf %258, %257 : vector<8x64xf32>
    %260 = arith.addf %255, %259 : vector<8x64xf32>
    %cst_115 = arith.constant 0.797884583 : f32
    %261 = vector.broadcast %cst_115 : f32 to vector<8x64xf32>
    %262 = arith.mulf %261, %260 : vector<8x64xf32>
    %263 = math.tanh %262 : vector<8x64xf32>
    %cst_116 = arith.constant 1.000000e+00 : f32
    %264 = vector.broadcast %cst_116 : f32 to vector<8x64xf32>
    %265 = arith.addf %264, %263 : vector<8x64xf32>
    %cst_117 = arith.constant 5.000000e-01 : f32
    %266 = vector.broadcast %cst_117 : f32 to vector<8x64xf32>
    %267 = arith.mulf %266, %265 : vector<8x64xf32>
    %268 = arith.mulf %255, %267 : vector<8x64xf32>
    %269 = arith.truncf %268 : vector<8x64xf32> to vector<8x64xbf16>
    %c1_118 = arith.constant 1 : index
    %c0_119 = arith.constant 0 : index
    %c0_120 = arith.constant 0 : index
    %270 = vector.load %arg13[%c1_118, %c0_119, %c0_120] : memref<2x64x32xbf16, #tpu.memory_space<vmem>>, vector<1x64x32xbf16>
    %271 = vector.shape_cast %270 : vector<1x64x32xbf16> to vector<64x32xbf16>
    %cst_121 = arith.constant dense<0.000000e+00> : vector<8x32xf32>
    %272 = tpu.matmul %269, %271, %cst_121 {dimension_numbers = #tpu.dot_dimension_numbers<[1], [0], [0], [1], [0, 0, 1, 1], [], []>} : vector<8x64xbf16>, vector<64x32xbf16>, vector<8x32xf32> -> vector<8x32xf32>
    %c1_122 = arith.constant 1 : index
    %c0_123 = arith.constant 0 : index
    %c0_124 = arith.constant 0 : index
    %273 = vector.load %arg14[%c1_122, %c0_123, %c0_124] : memref<2x1x32xf32, #tpu.memory_space<vmem>>, vector<1x1x32xf32>
    %274 = vector.shape_cast %273 : vector<1x1x32xf32> to vector<1x32xf32>
    %275 = vector.broadcast %274 : vector<1x32xf32> to vector<8x32xf32>
    %276 = arith.addf %272, %275 : vector<8x32xf32>
    %277 = arith.addf %276, %247 : vector<8x32xf32>
    %c1_125 = arith.constant 1 : index
    %c0_126 = arith.constant 0 : index
    %c0_127 = arith.constant 0 : index
    %278 = vector.load %arg15[%c1_125, %c0_126, %c0_127] : memref<2x1x32xf32, #tpu.memory_space<vmem>>, vector<1x1x32xf32>
    %279 = vector.shape_cast %278 : vector<1x1x32xf32> to vector<1x32xf32>
    %c1_128 = arith.constant 1 : index
    %c0_129 = arith.constant 0 : index
    %c0_130 = arith.constant 0 : index
    %280 = vector.load %arg16[%c1_128, %c0_129, %c0_130] : memref<2x1x32xf32, #tpu.memory_space<vmem>>, vector<1x1x32xf32>
    %281 = vector.shape_cast %280 : vector<1x1x32xf32> to vector<1x32xf32>
    %cst_131 = arith.constant dense<0.000000e+00> : vector<8xf32>
    %282 = vector.multi_reduction <add>, %277, %cst_131 [1] : vector<8x32xf32> to vector<8xf32>
    %283 = vector.shape_cast %282 : vector<8xf32> to vector<8x1xf32>
    %cst_132 = arith.constant 3.200000e+01 : f32
    %284 = vector.broadcast %cst_132 : f32 to vector<8x1xf32>
    %285 = arith.divf %283, %284 : vector<8x1xf32>
    %286 = vector.broadcast %285 : vector<8x1xf32> to vector<8x32xf32>
    %287 = arith.subf %277, %286 : vector<8x32xf32>
    %288 = arith.mulf %287, %287 : vector<8x32xf32>
    %cst_133 = arith.constant dense<0.000000e+00> : vector<8xf32>
    %289 = vector.multi_reduction <add>, %288, %cst_133 [1] : vector<8x32xf32> to vector<8xf32>
    %290 = vector.shape_cast %289 : vector<8xf32> to vector<8x1xf32>
    %cst_134 = arith.constant 3.200000e+01 : f32
    %291 = vector.broadcast %cst_134 : f32 to vector<8x1xf32>
    %292 = arith.divf %290, %291 : vector<8x1xf32>
    %cst_135 = arith.constant 9.99999996E-13 : f32
    %293 = vector.broadcast %cst_135 : f32 to vector<8x1xf32>
    %294 = arith.addf %292, %293 : vector<8x1xf32>
    %295 = math.rsqrt %294 : vector<8x1xf32>
    %296 = vector.broadcast %295 : vector<8x1xf32> to vector<8x32xf32>
    %297 = arith.mulf %287, %296 : vector<8x32xf32>
    %298 = vector.broadcast %279 : vector<1x32xf32> to vector<8x32xf32>
    %299 = arith.mulf %297, %298 : vector<8x32xf32>
    %300 = vector.broadcast %281 : vector<1x32xf32> to vector<8x32xf32>
    %301 = arith.addf %299, %300 : vector<8x32xf32>
    %302 = arith.truncf %301 : vector<8x32xf32> to vector<8x32xbf16>
    %c0_136 = arith.constant 0 : index
    %c0_137 = arith.constant 0 : index
    %303 = vector.load %arg17[%c0_136, %c0_137] : memref<32x128xbf16, #tpu.memory_space<vmem>>, vector<32x128xbf16>
    %cst_138 = arith.constant dense<0.000000e+00> : vector<8x128xf32>
    %304 = tpu.matmul %302, %303, %cst_138 {dimension_numbers = #tpu.dot_dimension_numbers<[1], [0], [0], [1], [0, 0, 1, 1], [], []>} : vector<8x32xbf16>, vector<32x128xbf16>, vector<8x128xf32> -> vector<8x128xf32>
    %c0_139 = arith.constant 0 : index
    %c0_140 = arith.constant 0 : index
    %305 = vector.load %arg18[%c0_139, %c0_140] : memref<1x128xf32, #tpu.memory_space<vmem>>, vector<1x128xf32>
    %306 = vector.broadcast %305 : vector<1x128xf32> to vector<8x128xf32>
    %307 = arith.addf %304, %306 : vector<8x128xf32>
    %c0_141 = arith.constant 0 : index
    %c0_142 = arith.constant 0 : index
    %c0_143 = arith.constant 0 : index
    %308 = vector.load %arg19[%c0_141, %c0_142, %c0_143] : memref<1x8x128xf32, #tpu.memory_space<vmem>>, vector<1x8x128xf32>
    %309 = vector.shape_cast %308 : vector<1x8x128xf32> to vector<8x128xf32>
    %310 = vector.shape_cast %307 : vector<8x128xf32> to vector<1x8x128xf32>
    tpu.vector_store %arg19[%c0_141, %c0_142, %c0_143], %310 {strides = array<i32>} : memref<1x8x128xf32, #tpu.memory_space<vmem>>, vector<1x8x128xf32>,
    return
  }
  func.func @transform_0(%arg0: i32) -> (i32, i32, i32) {
    %c0_i32 = arith.constant 0 : i32
    %c0_i32_0 = arith.constant 0 : i32
    %c0_i32_1 = arith.constant 0 : i32
    return %arg0, %c0_i32, %c0_i32_0 : i32, i32, i32
  }
  func.func @transform_1(%arg0: i32) -> (i32, i32, i32) {
    %c0_i32 = arith.constant 0 : i32
    %c0_i32_0 = arith.constant 0 : i32
    %c0_i32_1 = arith.constant 0 : i32
    return %arg0, %c0_i32, %c0_i32_0 : i32, i32, i32
  }
  func.func @transform_2(%arg0: i32) -> (i32, i32) {
    %c0_i32 = arith.constant 0 : i32
    %c0_i32_0 = arith.constant 0 : i32
    %c0_i32_1 = arith.constant 0 : i32
    return %c0_i32, %c0_i32_0 : i32, i32
  }
  func.func @transform_3(%arg0: i32) -> (i32, i32) {
    %c0_i32 = arith.constant 0 : i32
    %c0_i32_0 = arith.constant 0 : i32
    %c0_i32_1 = arith.constant 0 : i32
    return %c0_i32, %c0_i32_0 : i32, i32
  }
  func.func @transform_4(%arg0: i32) -> (i32, i32, i32) {
    %c0_i32 = arith.constant 0 : i32
    %c0_i32_0 = arith.constant 0 : i32
    %c0_i32_1 = arith.constant 0 : i32
    %c0_i32_2 = arith.constant 0 : i32
    return %c0_i32, %c0_i32_0, %c0_i32_1 : i32, i32, i32
  }
  func.func @transform_5(%arg0: i32) -> (i32, i32, i32) {
    %c0_i32 = arith.constant 0 : i32
    %c0_i32_0 = arith.constant 0 : i32
    %c0_i32_1 = arith.constant 0 : i32
    %c0_i32_2 = arith.constant 0 : i32
    return %c0_i32, %c0_i32_0, %c0_i32_1 : i32, i32, i32
  }
  func.func @transform_6(%arg0: i32) -> (i32, i32, i32) {
    %c0_i32 = arith.constant 0 : i32
    %c0_i32_0 = arith.constant 0 : i32
    %c0_i32_1 = arith.constant 0 : i32
    %c0_i32_2 = arith.constant 0 : i32
    return %c0_i32, %c0_i32_0, %c0_i32_1 : i32, i32, i32
  }
  func.func @transform_7(%arg0: i32) -> (i32, i32, i32) {
    %c0_i32 = arith.constant 0 : i32
    %c0_i32_0 = arith.constant 0 : i32
    %c0_i32_1 = arith.constant 0 : i32
    %c0_i32_2 = arith.constant 0 : i32
    return %c0_i32, %c0_i32_0, %c0_i32_1 : i32, i32, i32
  }
  func.func @transform_8(%arg0: i32) -> (i32, i32, i32) {
    %c0_i32 = arith.constant 0 : i32
    %c0_i32_0 = arith.constant 0 : i32
    %c0_i32_1 = arith.constant 0 : i32
    %c0_i32_2 = arith.constant 0 : i32
    return %c0_i32, %c0_i32_0, %c0_i32_1 : i32, i32, i32
  }
  func.func @transform_9(%arg0: i32) -> (i32, i32, i32) {
    %c0_i32 = arith.constant 0 : i32
    %c0_i32_0 = arith.constant 0 : i32
    %c0_i32_1 = arith.constant 0 : i32
    %c0_i32_2 = arith.constant 0 : i32
    return %c0_i32, %c0_i32_0, %c0_i32_1 : i32, i32, i32
  }
  func.func @transform_10(%arg0: i32) -> (i32, i32, i32) {
    %c0_i32 = arith.constant 0 : i32
    %c0_i32_0 = arith.constant 0 : i32
    %c0_i32_1 = arith.constant 0 : i32
    %c0_i32_2 = arith.constant 0 : i32
    return %c0_i32, %c0_i32_0, %c0_i32_1 : i32, i32, i32
  }
  func.func @transform_11(%arg0: i32) -> (i32, i32, i32) {
    %c0_i32 = arith.constant 0 : i32
    %c0_i32_0 = arith.constant 0 : i32
    %c0_i32_1 = arith.constant 0 : i32
    %c0_i32_2 = arith.constant 0 : i32
    return %c0_i32, %c0_i32_0, %c0_i32_1 : i32, i32, i32
  }
  func.func @transform_12(%arg0: i32) -> (i32, i32, i32) {
    %c0_i32 = arith.constant 0 : i32
    %c0_i32_0 = arith.constant 0 : i32
    %c0_i32_1 = arith.constant 0 : i32
    %c0_i32_2 = arith.constant 0 : i32
    return %c0_i32, %c0_i32_0, %c0_i32_1 : i32, i32, i32
  }
  func.func @transform_13(%arg0: i32) -> (i32, i32, i32) {
    %c0_i32 = arith.constant 0 : i32
    %c0_i32_0 = arith.constant 0 : i32
    %c0_i32_1 = arith.constant 0 : i32
    %c0_i32_2 = arith.constant 0 : i32
    return %c0_i32, %c0_i32_0, %c0_i32_1 : i32, i32, i32
  }
  func.func @transform_14(%arg0: i32) -> (i32, i32, i32) {
    %c0_i32 = arith.constant 0 : i32
    %c0_i32_0 = arith.constant 0 : i32
    %c0_i32_1 = arith.constant 0 : i32
    %c0_i32_2 = arith.constant 0 : i32
    return %c0_i32, %c0_i32_0, %c0_i32_1 : i32, i32, i32
  }
  func.func @transform_15(%arg0: i32) -> (i32, i32, i32) {
    %c0_i32 = arith.constant 0 : i32
    %c0_i32_0 = arith.constant 0 : i32
    %c0_i32_1 = arith.constant 0 : i32
    %c0_i32_2 = arith.constant 0 : i32
    return %c0_i32, %c0_i32_0, %c0_i32_1 : i32, i32, i32
  }
  func.func @transform_16(%arg0: i32) -> (i32, i32) {
    %c0_i32 = arith.constant 0 : i32
    %c0_i32_0 = arith.constant 0 : i32
    %c0_i32_1 = arith.constant 0 : i32
    return %c0_i32, %c0_i32_0 : i32, i32
  }
  func.func @transform_17(%arg0: i32) -> (i32, i32) {
    %c0_i32 = arith.constant 0 : i32
    %c0_i32_0 = arith.constant 0 : i32
    %c0_i32_1 = arith.constant 0 : i32
    return %c0_i32, %c0_i32_0 : i32, i32
  }
  func.func @transform_18(%arg0: i32) -> (i32, i32, i32) {
    %c0_i32 = arith.constant 0 : i32
    %c0_i32_0 = arith.constant 0 : i32
    %c0_i32_1 = arith.constant 0 : i32
    return %arg0, %c0_i32, %c0_i32_0 : i32, i32, i32
  }
}

</mosaic_0001>

<bundles_post_ra>
// kernel: tpu_custom_call.1
= control target key start
LH: loop header
LB: loop body
LE: loop exit
PB: predicated region body
PF: predicated region fallthrough
CT: control target
= control target key end

     0   :  { %s3721_s0 = inlined_call_operand.hbm [shape: f32[2,8,32], index: 0, kind: input, shape index: {}]   ;;  %s3722_s1 = inlined_call_operand.hbm [shape: f32[2,1,8], index: 1, kind: input, shape index: {}]   ;;  %s3723_s2 = inlined_call_operand.vmem [shape: f32[1,32], index: 2, kind: input, shape index: {}]   ;;  %s3724_s3 = inlined_call_operand.hbm [shape: f32[1,32], index: 3, kind: input, shape index: {}]   ;;  %s3725_s4 = inlined_call_operand.vmem [shape: bf16[2,32,128], index: 4, kind: input, shape index: {}]   ;;  %s3726_s5 = inlined_call_operand.hbm [shape: f32[2,1,128], index: 5, kind: input, shape index: {}]   ;;  %s3727_s6 = inlined_call_operand.vmem [shape: bf16[2,32,32], index: 6, kind: input, shape index: {}]   ;;  %s3728_s7 = inlined_call_operand.hbm [shape: f32[2,1,32], index: 7, kind: input, shape index: {}]   ;;  %s3729_s8 = inlined_call_operand.hbm [shape: f32[2,1,32], index: 8, kind: input, shape index: {}]   ;;  %s3730_s9 = inlined_call_operand.hbm [shape: f32[2,1,32], index: 9, kind: input, shape index: {}]   ;;  %s3731_s10 = inlined_call_operand.vmem [shape: bf16[2,32,64], index: 10, kind: input, shape index: {}]   ;;  %s3732_s11 = inlined_call_operand.hbm [shape: f32[2,1,64], index: 11, kind: input, shape index: {}]   ;;  %s3733_s12 = inlined_call_operand.vmem [shape: bf16[2,64,32], index: 12, kind: input, shape index: {}]   ;;  %s3734_s13 = inlined_call_operand.hbm [shape: f32[2,1,32], index: 13, kind: input, shape index: {}]   ;;  %s3735_s14 = inlined_call_operand.vmem [shape: f32[2,1,32], index: 14, kind: input, shape index: {}]   ;;  %s3736_s15 = inlined_call_operand.vmem [shape: f32[2,1,32], index: 15, kind: input, shape index: {}]   ;;  %s3737_s16 = inlined_call_operand.vmem [shape: bf16[32,128], index: 16, kind: input, shape index: {}]   ;;  %s3738_s17 = inlined_call_operand.vmem [shape: f32[1,128], index: 17, kind: input, shape index: {}]   ;;  %s3739_s18 = inlined_call_operand.hbm [shape: f32[2,8,128], index: 18, kind: output, shape index: {}]  }
   0x1   :  { %3753 = sst [smem:[#allocation25_spill]] %s3721_s0 }
   0x2   :  { %3754 = sst [smem:[#allocation26_spill]] %s3722_s1 }
   0x3   :  { %3755 = sst [smem:[#allocation27_spill]] %s3723_s2 }
   0x4   :  { %3756 = sst [smem:[#allocation28_spill]] %s3724_s3 }
   0x5   :  { %3757 = sst [smem:[#allocation29_spill]] %s3726_s5 }
   0x6   :  { %3758 = sst [smem:[#allocation30_spill]] %s3728_s7 }
   0x7   :  { %3759 = sst [smem:[#allocation31_spill]] %s3729_s8 }
   0x8   :  { %3760 = sst [smem:[#allocation32_spill]] %s3730_s9 }
   0x9   :  { %3761 = sst [smem:[#allocation33_spill]] %s3733_s12 }
   0xa   :  { %3762 = sst [smem:[#allocation34_spill]] %s3735_s14 }
   0xb   :  { %3763 = sst [smem:[#allocation35_spill]] %s3736_s15 }
   0xc   :  { %3764 = sst [smem:[#allocation36_spill]] %s3737_s16 }
   0xd   :  { %3765 = sst [smem:[#allocation37_spill]] %s3738_s17 }
   0xe   :  { %3766 = sst [smem:[#allocation38_spill]] %s3739_s18 }
   0xf   :  { %23 = vsyncpa [#allocation3], 0 }
  0x10   :  { %25 = vsyncpa [#allocation3 + $0x1], 0 }
  0x11   :  { %26 = vsyncpa [#allocation6], 0 }
  0x12   :  { %28 = vsyncpa [#allocation6 + $0x1], 0 }
  0x13   :  { %29 = vsyncpa [#allocation9], 0 }
  0x14   :  { %30 = vsyncpa [#allocation12], 0 }
  0x15   :  { %31 = vsyncpa [#allocation15], 0 }
  0x16   :  { %32 = vsyncpa [#allocation4], 0 }
  0x17   :  { %34 = vsyncpa [#allocation4 + $0x1], 0  ;;  %s3100_s27 = smov 0   ;;  %s3102_s28 = smov 0  }
  0x18   :  { %s3104_s29 = smov 0   ;;  %s3106_s30 = smov 0  }
  0x19 LB: > { %s2985_s0 = smov [#allocation7]   ;;  %s3121_s1 = sadd.s32 4294967295, %s2983_s30   ;;  %s2983_s30 = sphi %s3106_s30, %s3807_s30   ;;  %s2979_s29 = sphi %s3104_s29, %s3806_s29   ;;  %s2975_s28 = sphi %s3102_s28, %s3805_s28   ;;  %s2971_s27 = sphi %s3100_s27, %s3804_s27  }
  0x1a   : > { %s475_s19 = sshll.u32 %s2985_s0, 4  ;;  %p2175_p0 = scmp.ge.s32.totalorder %s2983_s30, 1  ;;  %s3126_s19 = int_to_ptr.vmem [resolvable:$true] %s475_s19 }
  0x1b   : > { %p3747_p1 = scmp.eq.s32.totalorder %s3121_s1, 0  ;;  %p459_p2 = scmp.lt.s32.totalorder %s2983_s30, 3 }
  0x1c   : > { %s2986_s21 = smov [#allocation8]   ;;  %s2987_s23 = smov [#allocation11]  }
  0x1d   : > { %p3128_p3 = pnand %p2175_p0, %p459_p2  ;;  %s488_s22 = sshll.u32 %s2986_s21, 4  ;;  %s3135_s22 = int_to_ptr.vmem [resolvable:$true] %s488_s22 }
  0x1e   : > { %s517_s24 = sshll.u32 %s2987_s23, 4  ;;  %s3769_s3 = sld [smem:[#allocation28_spill]]  ;;  %s3143_s24 = int_to_ptr.vmem [resolvable:$true] %s517_s24 }
  0x1f   : > { %s3767_s20 = scalar_select %p3128_p3, 1, 0 }
  0x20   : > { %p2491_p5 = pneg %p3128_p3 }
  0x22   : > { %p3139_p6 = pnand %p2491_p5, %p3747_p1 }
  0x24   : > { %s2641_s0 = scalar_lea.hbm %s3769_s3, 16  ;;  %p3153_p8 = pneg %p3139_p6 }
  0x25   : > { %p2642_p7 = scmp.ne.s32.totalorder %s3769_s3, %s2641_s0  ;;  %p2648_p11 = scmp.lt.u32.totalorder %s2641_s0, %s3769_s3 }
  0x27   : > { %p2644_p9 = pnand %p3153_p8, %p2642_p7 }
  0x29   : > { %p2645_p10 = pneg %p2644_p9 }
  0x2b   : > { %p2650_p12 = pnand %p2648_p11, %p2645_p10 }
  0x2d   : > { %2653 = shalt.err (!%p2650_p12)
}
  0x2e   : > { %s2654_s17 = scalar_lea.vmem %s3126_s19, 16  ;;  %s2661_s18 = scalar_lea.vmem %s3126_s19, 32 }
  0x2f   : > { %p2655_p13 = scmp.ne.s32.totalorder %s3126_s19, %s2654_s17  ;;  %p2662_p5 = scmp.lt.s32.totalorder %s3126_s19, %s3126_s19 }
  0x30   : > { %p2663_p7 = scmp.lt.s32.totalorder %s2661_s18, %s2654_s17 }
  0x31   : > { %p2657_p0 = pnand %p2655_p13, %p3153_p8 }
  0x32   : > { %p2664_p9 = por %p2663_p7, %p2662_p5 }
  0x33   : > { %p2658_p2 = pneg %p2657_p0 }
  0x35   : > { %p2665_p4 = pnand %p2664_p9, %p2658_p2 }
  0x37   : > { %2668 = shalt.err (!%p2665_p4)
}
  0x38   : > { %2494 = dma.hbm_to_vmem [thread:$0]  (!%p3139_p6), %s3769_s3, 16, %s3126_s19, [#allocation6]  }
  0x39   : > { %s3771_s5 = sld [smem:[#allocation29_spill]] }
  0x3f   : > { %s2669_s23 = scalar_lea.hbm %s3771_s5, 32 }
  0x40   : > { %p2670_p10 = scmp.ne.s32.totalorder %s3771_s5, %s2669_s23  ;;  %p2676_p4 = scmp.lt.u32.totalorder %s2669_s23, %s3771_s5 }
  0x42   : > { %p2672_p11 = pnand %p2670_p10, %p3153_p8 }
  0x44   : > { %p2673_p12 = pneg %p2672_p11 }
  0x46   : > { %p2678_p13 = pnand %p2676_p4, %p2673_p12 }
  0x48   : > { %2681 = shalt.err (!%p2678_p13)
}
  0x49   : > { %s2682_s19 = scalar_lea.vmem %s3135_s22, 32  ;;  %p2690_p7 = scmp.lt.s32.totalorder %s3135_s22, %s3135_s22 }
  0x4a   : > { %p2683_p0 = scmp.ne.s32.totalorder %s3135_s22, %s2682_s19  ;;  %p2691_p9 = scmp.lt.s32.totalorder %s2682_s19, %s2682_s19 }
  0x4c   : > { %p2685_p2 = pnand %p2683_p0, %p3153_p8  ;;  %p2692_p10 = por %p2691_p9, %p2690_p7 }
  0x4e   : > { %p2686_p5 = pneg %p2685_p2 }
  0x50   : > { %p2693_p11 = pnand %p2692_p10, %p2686_p5 }
  0x52   : > { %2696 = shalt.err (!%p2693_p11)
}
  0x53   : > { %s2988_s14 = smov 16   ;;  %s2989_s15 = smov 1  }
  0x54   : > { %2497 = dma.hbm_to_vmem [thread:$0]  (!%p3139_p6), %s3771_s5, 32, %s3135_s22, [#allocation9], %s2988_s14, %s2988_s14, %s2989_s15  }
  0x55   : > { %s3772_s8 = sld [smem:[#allocation31_spill]] }
  0x5b   : > { %s2697_s23 = scalar_lea.hbm %s3772_s8, 32 }
  0x5c   : > { %p2698_p12 = scmp.ne.s32.totalorder %s3772_s8, %s2697_s23  ;;  %p2704_p0 = scmp.lt.u32.totalorder %s2697_s23, %s3772_s8 }
  0x5e   : > { %p2700_p4 = pnand %p2698_p12, %p3153_p8 }
  0x60   : > { %p2701_p13 = pneg %p2700_p4 }
  0x62   : > { %p2706_p2 = pnand %p2704_p0, %p2701_p13 }
  0x64   : > { %2709 = shalt.err (!%p2706_p2)
}
  0x65   : > { %s2710_s22 = scalar_lea.vmem %s3143_s24, 32  ;;  %p2718_p10 = scmp.lt.s32.totalorder %s3143_s24, %s3143_s24 }
  0x66   : > { %p2711_p5 = scmp.ne.s32.totalorder %s3143_s24, %s2710_s22  ;;  %p2719_p11 = scmp.lt.s32.totalorder %s2710_s22, %s2710_s22 }
  0x68   : > { %p2713_p7 = pnand %p2711_p5, %p3153_p8  ;;  %p2720_p12 = por %p2719_p11, %p2718_p10 }
  0x6a   : > { %p2714_p9 = pneg %p2713_p7 }
  0x6c   : > { %p2721_p4 = pnand %p2720_p12, %p2714_p9 }
  0x6e   : > { %2724 = shalt.err (!%p2721_p4)
}
  0x6f   : > { %2503 = dma.hbm_to_vmem [thread:$0]  (!%p3139_p6), %s3772_s8, 32, %s3143_s24, [#allocation12], %s2988_s14, %s2988_s14, %s2989_s15  }
  0x70   : > { %s2990_s25 = smov [#allocation14]   ;;  %s2991_s0 = smov [#allocation10]  }
  0x71   : > { %s546_s26 = sshll.u32 %s2990_s25, 4  ;;  %s504_s23 = sshll.u32 %s2991_s0, 4  ;;  %s547_s26 = int_to_ptr.vmem [resolvable:$true] %s546_s26  ;;  %s505_s23 = int_to_ptr.vmem [resolvable:$true] %s504_s23 }
  0x72   : > { %s2725_s19 = scalar_lea.hbm %s3732_s11, 32 }
  0x73   : > { %p2726_p13 = scmp.ne.s32.totalorder %s3732_s11, %s2725_s19  ;;  %p2732_p5 = scmp.lt.u32.totalorder %s2725_s19, %s3732_s11 }
  0x75   : > { %p2728_p0 = pnand %p2726_p13, %p3153_p8 }
  0x77   : > { %p2729_p2 = pneg %p2728_p0 }
  0x79   : > { %p2734_p7 = pnand %p2732_p5, %p2729_p2 }
  0x7b   : > { %2737 = shalt.err (!%p2734_p7)
}
  0x7c   : > { %s2738_s24 = scalar_lea.vmem %s547_s26, 32  ;;  %p2746_p12 = scmp.lt.s32.totalorder %s547_s26, %s547_s26 }
  0x7d   : > { %p2739_p9 = scmp.ne.s32.totalorder %s547_s26, %s2738_s24  ;;  %p2747_p4 = scmp.lt.s32.totalorder %s2738_s24, %s2738_s24 }
  0x7f   : > { %p2741_p10 = pnand %p2739_p9, %p3153_p8  ;;  %p2748_p1 = por %p2747_p4, %p2746_p12 }
  0x81   : > { %p2742_p11 = pneg %p2741_p10 }
  0x83   : > { %p2749_p3 = pnand %p2748_p1, %p2742_p11 }
  0x85   : > { %2752 = shalt.err (!%p2749_p3)
}
  0x86   : > { %2509 = dma.hbm_to_vmem [thread:$0]  (!%p3139_p6), %s3732_s11, 32, %s547_s26, [#allocation15], %s2988_s14, %s2988_s14, %s2989_s15  }
  0x87   : > { %s3773_s7 = sld [smem:[#allocation30_spill]] }
  0x8d   : > { %s2753_s0 = scalar_lea.hbm %s3773_s7, 32 }
  0x8e   : > { %p2754_p1 = scmp.ne.s32.totalorder %s3773_s7, %s2753_s0  ;;  %p2760_p0 = scmp.lt.u32.totalorder %s2753_s0, %s3773_s7 }
  0x90   : > { %p2756_p3 = pnand %p2754_p1, %p3153_p8 }
  0x92   : > { %p2757_p13 = pneg %p2756_p3 }
  0x94   : > { %p2762_p2 = pnand %p2760_p0, %p2757_p13 }
  0x96   : > { %2765 = shalt.err (!%p2762_p2)
}
  0x97   : > { %s2766_s3 = scalar_lea.vmem %s505_s23, 32  ;;  %p2774_p10 = scmp.lt.s32.totalorder %s505_s23, %s505_s23 }
  0x98   : > { %p2767_p5 = scmp.ne.s32.totalorder %s505_s23, %s2766_s3  ;;  %p2775_p11 = scmp.lt.s32.totalorder %s2766_s3, %s2766_s3 }
  0x9a   : > { %p2769_p7 = pnand %p2767_p5, %p3153_p8  ;;  %p2776_p12 = por %p2775_p11, %p2774_p10 }
  0x9c   : > { %p2770_p9 = pneg %p2769_p7 }
  0x9e   : > { %p2777_p4 = pnand %p2776_p12, %p2770_p9 }
  0xa0   : > { %2780 = shalt.err (!%p2777_p4)
}
  0xa1   : > { %2500 = dma.hbm_to_vmem [thread:$0]  (!%p3139_p6), %s3773_s7, 32, %s505_s23, [#allocation9], %s2988_s14, %s2988_s14, %s2989_s15  }
  0xa2   : > { %s2992_s5 = smov [#allocation13]   ;;  %s2993_s16 = smov [#allocation16]  }
  0xa3   : > { %s530_s12 = sshll.u32 %s2992_s5, 4  ;;  %s562_s25 = sshll.u32 %s2993_s16, 4  ;;  %s531_s12 = int_to_ptr.vmem [resolvable:$true] %s530_s12  ;;  %s563_s25 = int_to_ptr.vmem [resolvable:$true] %s562_s25 }
  0xa4   : > { %s3774_s9 = sld [smem:[#allocation32_spill]] }
  0xaa   : > { %s2781_s18 = scalar_lea.hbm %s3774_s9, 32 }
  0xab   : > { %p2782_p1 = scmp.ne.s32.totalorder %s3774_s9, %s2781_s18  ;;  %p2788_p0 = scmp.lt.u32.totalorder %s2781_s18, %s3774_s9 }
  0xad   : > { %p2784_p3 = pnand %p2782_p1, %p3153_p8 }
  0xaf   : > { %p2785_p13 = pneg %p2784_p3 }
  0xb1   : > { %p2790_p2 = pnand %p2788_p0, %p2785_p13 }
  0xb3   : > { %2793 = shalt.err (!%p2790_p2)
}
  0xb4   : > { %s2794_s23 = scalar_lea.vmem %s531_s12, 32  ;;  %p2802_p10 = scmp.lt.s32.totalorder %s531_s12, %s531_s12 }
  0xb5   : > { %p2795_p5 = scmp.ne.s32.totalorder %s531_s12, %s2794_s23  ;;  %p2803_p11 = scmp.lt.s32.totalorder %s2794_s23, %s2794_s23 }
  0xb7   : > { %p2797_p7 = pnand %p2795_p5, %p3153_p8  ;;  %p2804_p12 = por %p2803_p11, %p2802_p10 }
  0xb9   : > { %p2798_p9 = pneg %p2797_p7 }
  0xbb   : > { %p2805_p4 = pnand %p2804_p12, %p2798_p9 }
  0xbd   : > { %2808 = shalt.err (!%p2805_p4)
}
  0xbe   : > { %2506 = dma.hbm_to_vmem [thread:$0]  (!%p3139_p6), %s3774_s9, 32, %s531_s12, [#allocation12], %s2988_s14, %s2988_s14, %s2989_s15  }
  0xbf   : > { %s2809_s17 = scalar_lea.hbm %s3734_s13, 32 }
  0xc0   : > { %p2810_p1 = scmp.ne.s32.totalorder %s3734_s13, %s2809_s17  ;;  %p2816_p0 = scmp.lt.u32.totalorder %s2809_s17, %s3734_s13 }
  0xc2   : > { %p2812_p3 = pnand %p2810_p1, %p3153_p8 }
  0xc4   : > { %p2813_p13 = pneg %p2812_p3 }
  0xc6   : > { %p2818_p2 = pnand %p2816_p0, %p2813_p13 }
  0xc8   : > { %2821 = shalt.err (!%p2818_p2)
}
  0xc9   : > { %s2822_s26 = scalar_lea.vmem %s563_s25, 32  ;;  %p2830_p10 = scmp.lt.s32.totalorder %s563_s25, %s563_s25 }
  0xca   : > { %p2823_p5 = scmp.ne.s32.totalorder %s563_s25, %s2822_s26  ;;  %p2831_p11 = scmp.lt.s32.totalorder %s2822_s26, %s2822_s26 }
  0xcc   : > { %p2825_p7 = pnand %p2823_p5, %p3153_p8  ;;  %p2832_p12 = por %p2831_p11, %p2830_p10 }
  0xce   : > { %p2826_p9 = pneg %p2825_p7 }
  0xd0   : > { %p2833_p4 = pnand %p2832_p12, %p2826_p9 }
  0xd2   : > { %2836 = shalt.err (!%p2833_p4)
}
  0xd3   : > { %2512 = dma.hbm_to_vmem [thread:$0]  (!%p3139_p6), %s3734_s13, 32, %s563_s25, [#allocation15], %s2988_s14, %s2988_s14, %s2989_s15  }
  0xd4   : > { %s2174_s2 = sadd.s32 4294967294, %s2983_s30   ;;  %s3313_s21 = sadd.s32 1, %s2983_s30  }
  0xd5   : > { %s47_s24 = sadd.s32 1, %s2979_s29  ;;  %s44_s5 = ssub.s32 %s2983_s30, %s3313_s21 }
  0xd6   : > { %p54_p8 = scmp.ne.s32.totalorder %s2979_s29, %s2975_s28  ;;  %p45_p1 = scmp.eq.s32.totalorder %s44_s5, 0 }
  0xd7   : > { %p55_p3 = scmp.eq.s32.totalorder %s2983_s30, 0  ;;  %p60_p13 = scmp.ne.s32.totalorder %s2975_s28, %s2971_s27 }
  0xd8   : > { %p446_p0 = scmp.eq.s32.totalorder %s3121_s1, 1  ;;  %p3775_p5 = scmp.eq.s32.totalorder %s3121_s1, 0 }
  0xd9   : > { %s3325_s16 = scalar_select %p45_p1, %s2979_s29, %s47_s24  }
  0xda   : > { %p56_p2 = por %p55_p3, %p54_p8  ;;  %p3329_p7 = por %p3775_p5, %p60_p13 }
  0xdb   : > { %p3333_p6 = por %p446_p0, %p54_p8  ;;  %p452_p9 = scmp.eq.s32.totalorder %s2174_s2, 1 }
  0xdc   : > { %s3776_s14 = scalar_select %p3329_p7, 1, 0 }
  0xdd   : > { %s3777_s15 = scalar_select %p3333_p6, 1, 0 }
  0xde   : > { %p2531_p10 = scmp.lt.s32.totalorder %s2983_s30, 2  ;;  %s3339_s25 = sand.u32 1, %s2979_s29  }
  0xdf   : > { %p3341_p11 = por %p452_p9, %p60_p13  ;;  %s2184_s17 = sshll.u32 %s3339_s25, 3 }
  0xe0   : > { %s2185_s18 = sshll.u32 %s2983_s30, 7  ;;  %s3779_s3 = sld [smem:[#allocation25_spill]] }
  0xe1   : > { %s3778_s0 = scalar_select %p3341_p11, 1, 0 }
  0xe2   : > { %s592_s12 = scalar_lea.vmem [#allocation2], %s2184_s17  ;;  %p3352_p12 = pnand %p2531_p10, %p56_p2 }
  0xe3   : > { %s599_s23 = sshll.u32 %s592_s12, 4  ;;  %s589_s5 = scalar_lea.sflag [#allocation3], %s3339_s25  ;;  %s3356_s23 = int_to_ptr.vmem [resolvable:$true] %s599_s23 }
  0xe4   : > { %p2839_p8 = pneg %p3352_p12 }
  0xe6   : > { %s3350_s26 = scalar_lea.hbm %s3779_s3, %s2185_s18  ;;  %s2842_s19 = scalar_lea.hbm %s3779_s3, 256 }
  0xe7   : > { %s2837_s7 = scalar_lea.hbm %s3350_s26, 128  ;;  %p2843_p13 = scmp.lt.u32.totalorder %s3350_s26, %s3779_s3 }
  0xe8   : > { %p2838_p4 = scmp.ne.s32.totalorder %s3350_s26, %s2837_s7  ;;  %p2844_p0 = scmp.lt.u32.totalorder %s2842_s19, %s2837_s7 }
  0xe9   : > { %p2846_p5 = scmp.lt.u32.totalorder %s2837_s7, %s3350_s26 }
  0xea   : > { %p2840_p1 = pnand %p2839_p8, %p2838_p4  ;;  %p2845_p2 = por %p2844_p0, %p2843_p13 }
  0xec   : > { %p2841_p3 = pneg %p2840_p1  ;;  %p2847_p9 = por %p2846_p5, %p2845_p2 }
  0xee   : > { %p2848_p10 = pnand %p2847_p9, %p2841_p3 }
  0xf0   : > { %2851 = shalt.err (!%p2848_p10)
}
  0xf1   : > { %s2852_s24 = scalar_lea.vmem %s3356_s23, 128  ;;  %s2994_s17 = smov [#allocation2]  }
  0xf2   : > { %p2853_p4 = scmp.ne.s32.totalorder %s3356_s23, %s2852_s24  ;;  %s2857_s18 = sshll.u32 %s2994_s17, 4  ;;  %s2858_s18 = int_to_ptr.vmem [resolvable:$false] %s2857_s18 }
  0xf3   : > { %s2859_s22 = scalar_lea.vmem %s2858_s18, 256  ;;  %p2860_p6 = scmp.lt.s32.totalorder %s3356_s23, %s2858_s18 }
  0xf4   : > { %p2855_p1 = pnand %p2853_p4, %p2839_p8  ;;  %p2861_p13 = scmp.lt.s32.totalorder %s2859_s22, %s2852_s24 }
  0xf6   : > { %p2856_p11 = pneg %p2855_p1  ;;  %p2862_p0 = por %p2861_p13, %p2860_p6 }
  0xf8   : > { %p2863_p2 = pnand %p2862_p0, %p2856_p11 }
  0xfa   : > { %2866 = shalt.err (!%p2863_p2)
}
  0xfb   : > { %2516 = dma.hbm_to_vmem [thread:$0]  (!%p3352_p12), %s3350_s26, 128, %s3356_s23, %s589_s5  }
  0xfc   : > { %s2186_s7 = sshll.u32 %s2983_s30, 4  ;;  %s3781_s17 = sld [smem:[#allocation26_spill]] }
  0xfd   : > { %s609_s24 = scalar_lea.vmem [#allocation5], %s3339_s25  ;;  %s3782_s22 = sand.u32 1, %s2983_s30  }
  0xfe   : > { %s616_s18 = sshll.u32 %s609_s24, 4  ;;  %s607_s8 = scalar_lea.sflag [#allocation6], %s3782_s22  ;;  %s617_s18 = int_to_ptr.vmem [resolvable:$true] %s616_s18 }
 0x102   : > { %s3389_s3 = scalar_lea.hbm %s3781_s17, %s2186_s7  ;;  %s2872_s5 = scalar_lea.hbm %s3781_s17, 32 }
 0x103   : > { %s2867_s9 = scalar_lea.hbm %s3389_s3, 16  ;;  %p2873_p5 = scmp.lt.u32.totalorder %s3389_s3, %s3781_s17 }
 0x104   : > { %p2868_p6 = scmp.ne.s32.totalorder %s3389_s3, %s2867_s9  ;;  %p2874_p9 = scmp.lt.u32.totalorder %s2872_s5, %s2867_s9 }
 0x105   : > { %p2876_p4 = scmp.lt.u32.totalorder %s2867_s9, %s3389_s3 }
 0x106   : > { %p2870_p11 = pnand %p2868_p6, %p2839_p8  ;;  %p2875_p10 = por %p2874_p9, %p2873_p5 }
 0x108   : > { %p2871_p3 = pneg %p2870_p11  ;;  %p2877_p1 = por %p2876_p4, %p2875_p10 }
 0x10a   : > { %p2878_p13 = pnand %p2877_p1, %p2871_p3 }
 0x10c   : > { %2881 = shalt.err (!%p2878_p13)
}
 0x10d   : > { %s2882_s25 = scalar_lea.vmem %s617_s18, 16  ;;  %s2995_s12 = smov [#allocation5]  }
 0x10e   : > { %p2883_p0 = scmp.ne.s32.totalorder %s617_s18, %s2882_s25  ;;  %s2887_s24 = sshll.u32 %s2995_s12, 4  ;;  %s2888_s24 = int_to_ptr.vmem [resolvable:$false] %s2887_s24 }
 0x10f   : > { %s2889_s22 = scalar_lea.vmem %s2888_s24, 32  ;;  %p2890_p11 = scmp.lt.s32.totalorder %s617_s18, %s2888_s24 }
 0x110   : > { %p2885_p2 = pnand %p2883_p0, %p2839_p8  ;;  %p2891_p7 = scmp.lt.s32.totalorder %s2889_s22, %s2882_s25 }
 0x112   : > { %p2886_p6 = pneg %p2885_p2  ;;  %p2892_p5 = por %p2891_p7, %p2890_p11 }
 0x114   : > { %p2893_p9 = pnand %p2892_p5, %p2886_p6 }
 0x116   : > { %2896 = shalt.err (!%p2893_p9)
}
 0x117   : > { %2519 = dma.hbm_to_vmem [thread:$0]  (!%p3352_p12), %s3389_s3, 16, %s617_s18, %s607_s8  }
 0x118   : > { %p3783_p3 = scmp.ne.s32.totalorder %s3767_s20, 0 }
 0x119   : > { %s3416_s9 = sand.u32 (!%p3783_p3), 1, %s2975_s28   ;;  %p3784_p7 = scmp.ne.s32.totalorder (!%p3783_p3), %s3776_s14, 0 }
 0x11a   : > { %625 = sbr.rel (%p3783_p3) target bundleno = 5875 (0x16f3), region = 92  ;;  %s3752_s26 = sshll.u32 (!%p3783_p3), %s3416_s9, 3 }
 0x11b   : > { %s628_s23 = scalar_lea.sflag (!%p3783_p3), [#allocation3], %s3416_s9  ;;  %s631_s5 = scalar_lea.vmem (!%p3783_p3), [#allocation2], %s3752_s26 }
 0x121   : > { %2942 = dma.done.wait (%p3784_p7), %s628_s23, 128  }
 0x122   : > { %2944 = vsyncadd (%p3784_p7), %s628_s23, 4294967168  ;;  %s636_s8 = sand.u32 1, %s3121_s1   ;;  %s639_s3 = scalar_lea.vmem [#allocation5], %s3416_s9 }
 0x123   : > { %s637_s20 = scalar_lea.sflag [#allocation6], %s636_s8 }
 0x124   : > { %2946 = dma.done.wait (%p3784_p7), %s637_s20, 16  }
 0x125   : > { %2948 = vsyncadd (%p3784_p7), %s637_s20, 4294967280  ;;  %p3785_p12 = scmp.eq.s32.totalorder %s3121_s1, 0 }
 0x127   : > { %2950 = dma.done.wait (%p3785_p12), [#allocation6], 16   ;;  %p3786_p8 = pmov %p3785_p12 }
 0x129   : > { %2952 = vsyncadd (%p3786_p8), [#allocation6], 4294967280  ;;  %p3787_p10 = pmov %p3786_p8 }
 0x12a   : > { %p3788_p4 = pmov %p3786_p8 }
 0x12b   : > { %2954 = dma.done.wait (%p3787_p10), [#allocation9], 64  }
 0x12c   : > { %2956 = vsyncadd (%p3788_p4), [#allocation9], 4294967232  ;;  %p3789_p1 = pmov %p3788_p4 }
 0x12e   : > { %2958 = dma.done.wait (%p3789_p1), [#allocation12], 64   ;;  %p3790_p13 = pmov %p3789_p1 }
 0x12f   : > { %p3791_p0 = pmov %p3789_p1 }
 0x130   : > { %2960 = vsyncadd (%p3790_p13), [#allocation12], 4294967232 }
 0x131   : > { %2962 = dma.done.wait (%p3791_p0), [#allocation15], 64   ;;  %p3792_p2 = pmov %p3791_p0 }
 0x132   : > { %vm728_vm0 = vcmask 261120   ;;  %v725_v0 = vld [vmem:[%s631_s5] sm:$0xff]  ;;  %v2996_v8 = vmov 0.0   ;;  %vm2997_vm1 = vmmov 0   ;;  %s3793_s12 = sld [smem:[#allocation27_spill]]  ;;  %s2998_s24 = smov 112  }
 0x133   : > { %2964 = vsyncadd (%p3792_p2), [#allocation15], 4294967232  ;;  %v729_v1 = vsel %vm728_vm0, %v725_v0, 0.0  ;;  %v2589_v7 = vld [vmem:[%s3725_s4] sm:$0xff]   ;;  %2329 = vmatprep.subr.bf16.mxu0 %v2996_v8  ;;  %2337 = vmatprep.subr.bf16.mxu1 %v2996_v8  ;;  %v2590_v9 = vld [vmem:[%s3725_s4 + $0x8] sm:$0xff]   ;;  %s2999_s22 = smov 96  }
 0x134   : > { %730 = vadd.xlane.f32.xlu0 %v729_v1  ;;  %2330 = vmatpush3.bf16.msra.mxu0 %v2589_v7  ;;  %v2198_v16 = vld [vmem:[#allocation7] ss:$0 sm:$0xff]  ;;  %v2199_v20 = vld [vmem:[#allocation8] ss:$0 sm:$0xff]  ;;  %s3000_s23 = smov 80   ;;  %vm835_vm2 = vcmask 130048  }
 0x135   : > { %2333 = vmatprep.mubr.msk.bf16.mxu0 %vm2997_vm1, %v2996_v8  ;;  %2331 = vmatprep.subr.bf16.mxu0 %v2996_v8  ;;  %v3489_v32 = vld [vmem:[%s639_s3] ss:$0 sm:$0xff]  ;;  %vm882_vm3 = vcmask 64512   ;;  %s3001_s5 = smov 48   ;;  %s3002_s8 = smov 64   ;;  %vm900_vm4 = vcmask 1043456  }
 0x136   : > { %2339 = vmatprep.mubr.msk.bf16.mxu1 %vm2997_vm1, %v2996_v8  ;;  %s3003_s18 = smov 16   ;;  %s3794_s14 = sld [smem:[#allocation33_spill]]  ;;  %vm1272_vm5 = vcmask 523264  }
 0x137   : > { %s3795_s20 = sld [smem:[#allocation34_spill]]  ;;  %s3796_s26 = sld [smem:[#allocation35_spill]] }
 0x138   : > { %2332 = vmatpush3.bf16.msra.mxu0 %v2590_v9  ;;  %v2197_v14 = vld [vmem:[%s3793_s12] ss:$0 sm:$0xff]  ;;  %s3797_s7 = sld [smem:[#allocation36_spill]]  ;;  %s3800_s2 = sld [smem:[#allocation38_spill]] }
 0x139   : > { %2343 = vmatprep.subr.bf16.mxu0 %v2996_v8  ;;  %p3801_p11 = scmp.ne.s32.totalorder %s3777_s15, 0 }
 0x1c1   : > { %v731_v2 = vpop.xlane.xlu0 %730 }
 0x1c2   : > { %v733_v3 = vmul.f32 0.03125, %v731_v2 }
 0x1c4   : > { %v734_v4 = vsub.f32 %v725_v0, %v733_v3  ;;  %v2591_v3 = vld [vmem:[%s3727_s6] sm:$0xff]  }
 0x1c6   : > { %v735_v5 = vmul.f32 %v734_v4, %v734_v4 }
 0x1c8   : > { %v736_v6 = vsel %vm728_vm0, %v735_v5, 0.0 }
 0x1c9   : > { %737 = vadd.xlane.f32.xlu0 %v736_v6 }
 0x256   : > { %v738_v10 = vpop.xlane.xlu0 %737 }
 0x257   : > { %v739_v11 = vmul.f32 0.03125, %v738_v10 }
 0x259   : > { %v740_v12 = vadd.f32 1e-12, %v739_v11 }
 0x25b   : > { %2611 = vrsqrt.f32 %v740_v12 }
 0x265   : > { %v2612_v13 = vpop.eup %2611 }
 0x266   : > { %v742_v15 = vmul.f32 %v2612_v13, %v734_v4  ;;  %v2592_v4 = vld [vmem:[%s3727_s6 + $0x8] sm:$0xff]  }
 0x268   : > { %v749_v17 = vmul.f32 %v2197_v14, %v742_v15 }
 0x26a   : > { %v3467_v18 = vadd.f32 %v2198_v16, %v749_v17  ;;  %v2208_v17 = vld [vmem:[#allocation10] ss:$0 sm:$0xff] }
 0x26c   : > { %v758_v19 = vpack.c.bf16 %v3467_v18, %v3467_v18 }
 0x26e   : > { %2334 = vmatmul.mubr.msk.bf16.vlgmr.msra.gmra.mrb[0].mxu0 %vm728_vm0, %v758_v19 }
 0x26f   : > { %2345 = vmatprep.mubr.msk.bf16.mxu0 %vm2997_vm1, %v2996_v8 }
 0x341   : > { %v819_v21 = vpop.f32.mrb[0].mxu0 }
 0x342   : > { %v820_v22 = vadd.f32 %v2199_v20, %v819_v21  ;;  %v2335_v23 = vpop.f32.mrb[1].mxu0 }
 0x343   : > { %v822_v24 = vpop.f32.mrb[2].mxu0 }
 0x344   : > { %v825_v25 = vpack.c.bf16 %v820_v22, %v820_v22  ;;  %v2336_v26 = vpop.f32.mrb[3].mxu0 }
 0x346   : > { %944 = vrot.lane.b32.xlu0 %v825_v25, %s2998_s24  ;;  %833 = vrot.lane.b32.xlu1 %v825_v25, %s2999_s22 }
 0x34a   : > { %946 = vrot.lane.b32.xlu1 %v825_v25, %s3000_s23 }
 0x3b8   : > { %v834_v27 = vpop.permute.xlu1 %833  ;;  %v945_v31 = vpop.permute.xlu0 %944 }
 0x3b9   : > { %v840_v28 = vsel %vm835_vm2, %v834_v27, 0 }
 0x3ba   : > { %2338 = vmatpush3.bf16.xpose.msra.mxu1 %v840_v28 }
 0x3bb   : > { %2349 = vmatprep.subr.bf16.mxu1 %v2996_v8 }
 0x3bc   : > { %v947_v29 = vpop.permute.xlu1 %946 }
 0x3bd   : > { %v952_v30 = vsel %vm835_vm2, %v947_v29, 0 }
 0x3c1   : > { %2340 = vmatmul.mubr.msk.bf16.vlgmr.msra.gmra.mrb[0].mxu1 %vm835_vm2, %v825_v25 }
 0x3c2   : > { %2350 = vmatpush3.bf16.xpose.msra.mxu1 %v952_v30  ;;  %2351 = vmatprep.mubr.msk.bf16.mxu1 %vm2997_vm1, %v2996_v8 }
 0x3c3   : > { %2361 = vmatprep.subr.bf16.mxu1 %v2996_v8 }
 0x3c9   : > { %2352 = vmatmul.mubr.msk.bf16.vlgmr.msra.gmra.mrb[4].mxu1 %vm835_vm2, %v945_v31  ;;  %v2593_v31 = vld [vmem:[%s3731_s10] sm:$0xff]  }
 0x3ca   : > { %2365 = vmatprep.mubr.msk.bf16.mxu1 %vm2997_vm1, %v2996_v8  ;;  %2362 = vmatpush3.bf16.msra.mxu1 %v2591_v3 }
 0x3cb   : > { %2363 = vmatprep.subr.bf16.mxu1 %v2996_v8 }
 0x3ce   : > { %2364 = vmatpush3.bf16.msra.mxu1 %v2592_v4 }
 0x3cf   : > { %2377 = vmatprep.subr.bf16.mxu1 %v2996_v8 }
 0x494   : > { %v876_v33 = vpop.f32.mrb[0].mxu1 }
 0x495   : > { %v877_v34 = vadd.f32 %v3489_v32, %v876_v33  ;;  %v2341_v35 = vpop.f32.mrb[1].mxu1 }
 0x496   : > { %v879_v36 = vpop.f32.mrb[2].mxu1 }
 0x497   : > { %v2342_v37 = vpop.f32.mrb[3].mxu1  ;;  %v883_v38 = vsel %vm882_vm3, %v877_v34, -inf }
 0x498   : > { %884 = vmax.xlane.f32.xlu1 %v883_v38  ;;  %v2212_v37 = vld [vmem:[#allocation11] ss:$0 sm:$0xff] }
 0x49c   : > { %v988_v39 = vpop.f32.mrb[4].mxu1 }
 0x49d   : > { %v989_v40 = vadd.f32 %v3489_v32, %v988_v39  ;;  %v2353_v41 = vpop.f32.mrb[5].mxu1  ;;  %v2213_v39 = vld [vmem:[#allocation13] ss:$0 sm:$0xff] }
 0x49e   : > { %v991_v42 = vpop.f32.mrb[6].mxu1 }
 0x49f   : > { %v2354_v43 = vpop.f32.mrb[7].mxu1  ;;  %v994_v44 = vsel %vm882_vm3, %v989_v40, -inf }
 0x4a0   : > { %995 = vmax.xlane.f32.xlu0 %v994_v44  ;;  %v2595_v43 = vld [vmem:[%s3794_s14] sm:$0xff]   ;;  %v2596_v44 = vld [vmem:[%s3794_s14 + $0x8] sm:$0xff]  }
 0x4b6   : > { %1006 = vrot.lane.b32.xlu0 %v825_v25, %s3001_s5 }
 0x525   : > { %v885_v45 = vpop.xlane.xlu1 %884 }
 0x526   : > { %v886_v46 = vsub.f32 %v877_v34, %v885_v45  ;;  %v2597_v45 = vld [vmem:[%s3794_s14 + $0x10] sm:$0xff]  }
 0x528   : > { %v887_v47 = vmul.f32 1.442695, %v886_v46  ;;  %v2598_v46 = vld [vmem:[%s3794_s14 + $0x18] sm:$0xff]  }
 0x52a   : > { %2613 = vpow2.f32 %v887_v47  ;;  %v2214_v47 = vld [vmem:[#allocation14] ss:$0 sm:$0xff] }
 0x52d   : > { %v996_v48 = vpop.xlane.xlu0 %995 }
 0x52e   : > { %v997_v49 = vsub.f32 %v989_v40, %v996_v48 }
 0x530   : > { %v998_v50 = vmul.f32 1.442695, %v997_v49 }
 0x531   : > { %v1007_v61 = vpop.permute.xlu0 %1006 }
 0x532   : > { %2615 = vpow2.f32 %v998_v50  ;;  %v1012_v63 = vsel %vm900_vm4, %v1007_v61, 0 }
 0x534   : > { %v2614_v51 = vpop.eup %2613 }
 0x535   : > { %v889_v52 = vsel %vm882_vm3, %v2614_v51, 0.0 }
 0x536   : > { %890 = vadd.xlane.f32.xlu1 %v889_v52 }
 0x53c   : > { %v2616_v53 = vpop.eup %2615 }
 0x53d   : > { %v1000_v54 = vsel %vm882_vm3, %v2616_v53, 0.0 }
 0x53e   : > { %1001 = vadd.xlane.f32.xlu1 %v1000_v54 }
 0x54f   : > { %895 = vrot.lane.b32.xlu1 %v825_v25, %s3002_s8 }
 0x5c3   : > { %v891_v55 = vpop.xlane.xlu1 %890 }
 0x5c4   : > { %2617 = vrcp.f32 %v891_v55 }
 0x5cb   : > { %v1002_v56 = vpop.xlane.xlu1 %1001 }
 0x5cc   : > { %2619 = vrcp.f32 %v1002_v56 }
 0x5ce   : > { %v2618_v57 = vpop.eup %2617 }
 0x5cf   : > { %v893_v58 = vmul.f32 %v2618_v57, %v2614_v51  ;;  %v896_v59 = vpop.permute.xlu1 %895 }
 0x5d0   : > { %v902_v60 = vsel %vm900_vm4, %v896_v59, 0 }
 0x5d1   : > { %2344 = vmatpush3.bf16.msra.mxu0 %v902_v60  ;;  %v894_v62 = vpack.c.bf16 %v893_v58, %v893_v58 }
 0x5d2   : > { %2355 = vmatprep.subr.bf16.mxu0 %v2996_v8 }
 0x5d4   : > { %2346 = vmatmul.mubr.msk.bf16.vlgmr.msra.gmra.mrb[4].mxu0 %vm882_vm3, %v894_v62 }
 0x5d5   : > { %2356 = vmatpush3.bf16.msra.mxu0 %v1012_v63  ;;  %2357 = vmatprep.mubr.msk.bf16.mxu0 %vm2997_vm1, %v2996_v8  ;;  %v2218_v63 = vld [vmem:[#allocation16] ss:$0 sm:$0xff] }
 0x5d6   : > { %v2620_v0 = vpop.eup %2619  ;;  %2369 = vmatprep.subr.bf16.mxu0 %v2996_v8 }
 0x5d7   : > { %v1004_v1 = vmul.f32 %v2620_v0, %v2616_v53 }
 0x5d9   : > { %v1005_v2 = vpack.c.bf16 %v1004_v1, %v1004_v1 }
 0x5dc   : > { %2358 = vmatmul.mubr.msk.bf16.vlgmr.msra.gmra.mrb[8].mxu0 %vm882_vm3, %v1005_v2 }
 0x5dd   : > { %2373 = vmatprep.mubr.msk.bf16.mxu0 %vm2997_vm1, %v2996_v8  ;;  %2370 = vmatpush3.bf16.msra.mxu0 %v2593_v31 }
 0x5de   : > { %2371 = vmatprep.subr.bf16.mxu0 %v2996_v8 }
 0x6a7   : > { %v938_v5 = vpop.f32.mrb[4].mxu0 }
 0x6a8   : > { %v2347_v6 = vpop.f32.mrb[5].mxu0 }
 0x6a9   : > { %v941_v7 = vpop.f32.mrb[6].mxu0 }
 0x6aa   : > { %v2348_v9 = vpop.f32.mrb[7].mxu0 }
 0x6af   : > { %v1048_v10 = vpop.f32.mrb[8].mxu0 }
 0x6b0   : > { %1055 = vrot.lane.b32.xlu1 %v1048_v10, %s3003_s18  ;;  %v2359_v11 = vpop.f32.mrb[9].mxu0 }
 0x6b1   : > { %v1051_v12 = vpop.f32.mrb[10].mxu0 }
 0x6b2   : > { %v2360_v13 = vpop.f32.mrb[11].mxu0 }
 0x6b3   : > { %v2599_v13 = vld [vmem:[%s3725_s4 + $0x10] sm:$0xff]  }
 0x722   : > { %v1056_v14 = vpop.permute.xlu1 %1055 }
 0x723   : > { %v1058_v15 = vsel %vm835_vm2, %v938_v5, %v1056_v14  ;;  %v2600_v14 = vld [vmem:[%s3725_s4 + $0x18] sm:$0xff]  }
 0x724   : > { %v1059_v16 = vpack.c.bf16 %v1058_v15, %v1058_v15 }
 0x726   : > { %2366 = vmatmul.mubr.msk.bf16.vlgmr.msra.gmra.mrb[8].mxu1 %vm728_vm0, %v1059_v16 }
 0x727   : > { %2385 = vmatprep.mubr.msk.bf16.mxu1 %vm2997_vm1, %v2996_v8  ;;  %2378 = vmatpush3.bf16.msra.mxu1 %v2595_v43 }
 0x728   : > { %2379 = vmatprep.subr.bf16.mxu1 %v2996_v8 }
 0x72b   : > { %2380 = vmatpush3.bf16.msra.mxu1 %v2596_v44 }
 0x72c   : > { %2381 = vmatprep.subr.bf16.mxu1 %v2996_v8 }
 0x72f   : > { %2382 = vmatpush3.bf16.msra.mxu1 %v2597_v45 }
 0x730   : > { %2383 = vmatprep.subr.bf16.mxu1 %v2996_v8 }
 0x733   : > { %2384 = vmatpush3.bf16.msra.mxu1 %v2598_v46 }
 0x734   : > { %2403 = vmatprep.subr.bf16.mxu1 %v2996_v8 }
 0x7f9   : > { %v1120_v19 = vpop.f32.mrb[8].mxu1 }
 0x7fa   : > { %v1121_v20 = vadd.f32 %v2208_v17, %v1120_v19  ;;  %v2367_v21 = vpop.f32.mrb[9].mxu1 }
 0x7fb   : > { %v1123_v22 = vpop.f32.mrb[10].mxu1 }
 0x7fc   : > { %v2368_v23 = vpop.f32.mrb[11].mxu1  ;;  %v1126_v24 = vadd.f32 %v1121_v20, %v3467_v18  ;;  %v2594_v18 = vld [vmem:[%s3731_s10 + $0x8] sm:$0xff]   ;;  %v2224_v20 = vld [vmem:[%s3795_s20] ss:$0 sm:$0xff] }
 0x7fd   : > { %2372 = vmatpush3.bf16.msra.mxu0 %v2594_v18  ;;  %v2225_v22 = vld [vmem:[%s3796_s26] ss:$0 sm:$0xff] }
 0x7fe   : > { %v1129_v25 = vsel %vm728_vm0, %v1126_v24, 0.0  ;;  %2389 = vmatprep.subr.bf16.mxu0 %v2996_v8 }
 0x7ff   : > { %1130 = vadd.xlane.f32.xlu1 %v1129_v25 }
 0x88c   : > { %v1131_v26 = vpop.xlane.xlu1 %1130 }
 0x88d   : > { %v1132_v27 = vmul.f32 0.03125, %v1131_v26  ;;  %v2230_v26 = vld [vmem:[#allocation8 + $0x1] ss:$0 sm:$0xff] }
 0x88f   : > { %v1133_v28 = vsub.f32 %v1126_v24, %v1132_v27 }
 0x891   : > { %v1134_v29 = vmul.f32 %v1133_v28, %v1133_v28 }
 0x893   : > { %v1135_v30 = vsel %vm728_vm0, %v1134_v29, 0.0 }
 0x894   : > { %1136 = vadd.xlane.f32.xlu0 %v1135_v30 }
 0x921   : > { %v1137_v33 = vpop.xlane.xlu0 %1136 }
 0x922   : > { %v1138_v34 = vmul.f32 0.03125, %v1137_v33 }
 0x924   : > { %v1139_v35 = vadd.f32 1e-12, %v1138_v34 }
 0x926   : > { %2621 = vrsqrt.f32 %v1139_v35 }
 0x930   : > { %v2622_v36 = vpop.eup %2621 }
 0x931   : > { %v1141_v38 = vmul.f32 %v2622_v36, %v1133_v28 }
 0x933   : > { %v1148_v40 = vmul.f32 %v2212_v37, %v1141_v38 }
 0x935   : > { %v1155_v41 = vadd.f32 %v2213_v39, %v1148_v40 }
 0x937   : > { %v1156_v42 = vpack.c.bf16 %v1155_v41, %v1155_v41 }
 0x939   : > { %2374 = vmatmul.mubr.msk.bf16.vlgmr.msra.gmra.mrb[12].mxu0 %vm728_vm0, %v1156_v42 }
 0x93a   : > { %2393 = vmatprep.mubr.msk.bf16.mxu0 %vm2997_vm1, %v2996_v8  ;;  %2390 = vmatpush3.bf16.msra.mxu0 %v2599_v13 }
 0x93b   : > { %2391 = vmatprep.subr.bf16.mxu0 %v2996_v8 }
 0x93e   : > { %2392 = vmatpush3.bf16.msra.mxu0 %v2600_v14 }
 0x93f   : > { %2397 = vmatprep.subr.bf16.mxu0 %v2996_v8 }
 0xa0c   : > { %v1217_v48 = vpop.f32.mrb[12].mxu0 }
 0xa0d   : > { %v1218_v49 = vadd.f32 %v2214_v47, %v1217_v48  ;;  %v2375_v50 = vpop.f32.mrb[13].mxu0 }
 0xa0e   : > { %v1220_v51 = vpop.f32.mrb[14].mxu0 }
 0xa0f   : > { %v1223_v52 = vmul.f32 %v1218_v49, %v1218_v49  ;;  %v2376_v53 = vpop.f32.mrb[15].mxu0 }
 0xa11   : > { %v1224_v54 = vmul.f32 %v1223_v52, %v1218_v49 }
 0xa13   : > { %v1225_v55 = vmul.f32 0.044715, %v1224_v54 }
 0xa15   : > { %v1226_v56 = vadd.f32 %v1225_v55, %v1218_v49 }
 0xa17   : > { %v1227_v57 = vmul.f32 0.7978846, %v1226_v56 }
 0xa19   : > { %2623 = vtanh.f32 %v1227_v57 }
 0xa23   : > { %v2624_v58 = vpop.eup %2623 }
 0xa24   : > { %v1229_v59 = vadd.f32 1.0, %v2624_v58 }
 0xa26   : > { %v1230_v60 = vmul.f32 0.5, %v1229_v59 }
 0xa28   : > { %v1231_v61 = vmul.f32 %v1230_v60, %v1218_v49 }
 0xa2a   : > { %v1232_v62 = vpack.c.bf16 %v1231_v61, %v1231_v61 }
 0xa2c   : > { %2386 = vmatmul.mubr.msk.bf16.vlgmr.msra.gmra.mrb[12].mxu1 %vm1272_vm5, %v1232_v62 }
 0xa2d   : > { %2405 = vmatprep.mubr.msk.bf16.mxu1 %vm2997_vm1, %v2996_v8 }
 0xaff   : > { %v1310_v0 = vpop.f32.mrb[12].mxu1 }
 0xb00   : > { %v1311_v1 = vadd.f32 %v2218_v63, %v1310_v0  ;;  %v2387_v2 = vpop.f32.mrb[13].mxu1 }
 0xb01   : > { %v1313_v3 = vpop.f32.mrb[14].mxu1 }
 0xb02   : > { %v2388_v4 = vpop.f32.mrb[15].mxu1  ;;  %v1316_v5 = vadd.f32 %v1311_v1, %v1155_v41 }
 0xb04   : > { %v1319_v6 = vsel %vm728_vm0, %v1316_v5, 0.0 }
 0xb05   : > { %1320 = vadd.xlane.f32.xlu1 %v1319_v6 }
 0xb92   : > { %v1321_v7 = vpop.xlane.xlu1 %1320 }
 0xb93   : > { %v1322_v9 = vmul.f32 0.03125, %v1321_v7  ;;  %v2601_v7 = vld [vmem:[%s3727_s6 + $0x10] sm:$0xff]  }
 0xb95   : > { %v1323_v10 = vsub.f32 %v1316_v5, %v1322_v9  ;;  %v2602_v9 = vld [vmem:[%s3727_s6 + $0x18] sm:$0xff]  }
 0xb97   : > { %v1324_v11 = vmul.f32 %v1323_v10, %v1323_v10 }
 0xb99   : > { %v1325_v12 = vsel %vm728_vm0, %v1324_v11, 0.0 }
 0xb9a   : > { %1326 = vadd.xlane.f32.xlu1 %v1325_v12 }
 0xc27   : > { %v1327_v15 = vpop.xlane.xlu1 %1326 }
 0xc28   : > { %v1328_v16 = vmul.f32 0.03125, %v1327_v15 }
 0xc2a   : > { %v1329_v17 = vadd.f32 1e-12, %v1328_v16 }
 0xc2c   : > { %2625 = vrsqrt.f32 %v1329_v17 }
 0xc36   : > { %v2626_v19 = vpop.eup %2625 }
 0xc37   : > { %v1331_v21 = vmul.f32 %v2626_v19, %v1323_v10 }
 0xc39   : > { %v1338_v23 = vmul.f32 %v2224_v20, %v1331_v21 }
 0xc3b   : > { %v3571_v24 = vadd.f32 %v2225_v22, %v1338_v23  ;;  %v2242_v22 = vld [vmem:[#allocation10 + $0x1] ss:$0 sm:$0xff] }
 0xc3d   : > { %v1346_v25 = vpack.c.bf16 %v3571_v24, %v3571_v24 }
 0xc3f   : > { %2394 = vmatmul.mubr.msk.bf16.vlgmr.msra.gmra.mrb[16].mxu0 %vm728_vm0, %v1346_v25 }
 0xc40   : > { %2399 = vmatprep.mubr.msk.bf16.mxu0 %vm2997_vm1, %v2996_v8 }
 0xd12   : > { %v1409_v27 = vpop.f32.mrb[16].mxu0 }
 0xd13   : > { %v1410_v28 = vadd.f32 %v2230_v26, %v1409_v27  ;;  %v2395_v29 = vpop.f32.mrb[17].mxu0 }
 0xd14   : > { %v1412_v30 = vpop.f32.mrb[18].mxu0 }
 0xd15   : > { %v1415_v31 = vpack.c.bf16 %v1410_v28, %v1410_v28  ;;  %v2396_v18 = vpop.f32.mrb[19].mxu0 }
 0xd17   : > { %1527 = vrot.lane.b32.xlu1 %v1415_v31, %s3000_s23  ;;  %1417 = vrot.lane.b32.xlu0 %v1415_v31, %s2999_s22  ;;  %s3004_s23 = smov [#allocation17]  }
 0xd1b   : > { %1525 = vrot.lane.b32.xlu1 %v1415_v31, %s2998_s24 }
 0xd89   : > { %v1418_v33 = vpop.permute.xlu0 %1417  ;;  %v1528_v35 = vpop.permute.xlu1 %1527 }
 0xd8a   : > { %v1423_v34 = vsel %vm835_vm2, %v1418_v33, 0  ;;  %v1533_v36 = vsel %vm835_vm2, %v1528_v35, 0 }
 0xd8b   : > { %2398 = vmatpush3.bf16.xpose.msra.mxu0 %v1423_v34 }
 0xd8c   : > { %2409 = vmatprep.subr.bf16.mxu0 %v2996_v8 }
 0xd8d   : > { %v1526_v37 = vpop.permute.xlu1 %1525 }
 0xd92   : > { %2400 = vmatmul.mubr.msk.bf16.vlgmr.msra.gmra.mrb[20].mxu0 %vm835_vm2, %v1415_v31 }
 0xd93   : > { %2410 = vmatpush3.bf16.xpose.msra.mxu0 %v1533_v36  ;;  %2411 = vmatprep.mubr.msk.bf16.mxu0 %vm2997_vm1, %v2996_v8  ;;  %v2603_v36 = vld [vmem:[%s3731_s10 + $0x10] sm:$0xff]  }
 0xd94   : > { %2421 = vmatprep.subr.bf16.mxu0 %v2996_v8 }
 0xd9a   : > { %2412 = vmatmul.mubr.msk.bf16.vlgmr.msra.gmra.mrb[24].mxu0 %vm835_vm2, %v1526_v37  ;;  %v2604_v37 = vld [vmem:[%s3731_s10 + $0x18] sm:$0xff]  }
 0xd9b   : > { %2425 = vmatprep.mubr.msk.bf16.mxu0 %vm2997_vm1, %v2996_v8  ;;  %2422 = vmatpush3.bf16.msra.mxu0 %v2601_v7 }
 0xd9c   : > { %2423 = vmatprep.subr.bf16.mxu0 %v2996_v8 }
 0xd9f   : > { %2424 = vmatpush3.bf16.msra.mxu0 %v2602_v9 }
 0xda0   : > { %2437 = vmatprep.subr.bf16.mxu0 %v2996_v8 }
 0xe65   : > { %v1459_v38 = vpop.f32.mrb[20].mxu0 }
 0xe66   : > { %v1460_v39 = vadd.f32 %v3489_v32, %v1459_v38  ;;  %v2401_v40 = vpop.f32.mrb[21].mxu0 }
 0xe67   : > { %v1462_v41 = vpop.f32.mrb[22].mxu0 }
 0xe68   : > { %v2402_v42 = vpop.f32.mrb[23].mxu0  ;;  %v1465_v43 = vsel %vm882_vm3, %v1460_v39, -inf  ;;  %v2246_v41 = vld [vmem:[#allocation11 + $0x1] ss:$0 sm:$0xff] }
 0xe69   : > { %1466 = vmax.xlane.f32.xlu0 %v1465_v43  ;;  %v2247_v43 = vld [vmem:[#allocation13 + $0x1] ss:$0 sm:$0xff] }
 0xe6d   : > { %v1569_v44 = vpop.f32.mrb[24].mxu0 }
 0xe6e   : > { %v1570_v45 = vadd.f32 %v3489_v32, %v1569_v44  ;;  %v2413_v46 = vpop.f32.mrb[25].mxu0 }
 0xe6f   : > { %v1572_v47 = vpop.f32.mrb[26].mxu0 }
 0xe70   : > { %v2414_v48 = vpop.f32.mrb[27].mxu0  ;;  %v1575_v49 = vsel %vm882_vm3, %v1570_v45, -inf  ;;  %v2605_v47 = vld [vmem:[%s3794_s14 + $0x20] sm:$0xff]  }
 0xe71   : > { %1576 = vmax.xlane.f32.xlu1 %v1575_v49  ;;  %v2606_v48 = vld [vmem:[%s3794_s14 + $0x28] sm:$0xff]   ;;  %v2607_v49 = vld [vmem:[%s3794_s14 + $0x30] sm:$0xff]  }
 0xe82   : > { %1477 = vrot.lane.b32.xlu1 %v1415_v31, %s3002_s8  ;;  %s2279_s8 = sshll.u32 %s3121_s1, 7  ;;  %s2005_s1 = scalar_lea.sflag [#allocation4], %s3416_s9 }
 0xe83   : > { %s3677_s24 = scalar_lea.hbm %s3800_s2, %s2279_s8 }
 0xef6   : > { %v1467_v50 = vpop.xlane.xlu0 %1466 }
 0xef7   : > { %v1468_v51 = vsub.f32 %v1460_v39, %v1467_v50  ;;  %v2608_v50 = vld [vmem:[%s3794_s14 + $0x38] sm:$0xff]  }
 0xef9   : > { %v1469_v52 = vmul.f32 1.442695, %v1468_v51  ;;  %v2252_v51 = vld [vmem:[#allocation14 + $0x1] ss:$0 sm:$0xff] }
 0xefb   : > { %2627 = vpow2.f32 %v1469_v52 }
 0xefe   : > { %v1577_v53 = vpop.xlane.xlu1 %1576 }
 0xeff   : > { %v1578_v54 = vsub.f32 %v1570_v45, %v1577_v53 }
 0xf01   : > { %v1579_v55 = vmul.f32 1.442695, %v1578_v54 }
 0xf02   : > { %v1478_v56 = vpop.permute.xlu1 %1477 }
 0xf03   : > { %2629 = vpow2.f32 %v1579_v55  ;;  %v1483_v57 = vsel %vm900_vm4, %v1478_v56, 0 }
 0xf04   : > { %2404 = vmatpush3.bf16.msra.mxu1 %v1483_v57 }
 0xf05   : > { %v2628_v32 = vpop.eup %2627  ;;  %2415 = vmatprep.subr.bf16.mxu1 %v2996_v8 }
 0xf06   : > { %v1471_v58 = vsel %vm882_vm3, %v2628_v32, 0.0 }
 0xf07   : > { %1472 = vadd.xlane.f32.xlu0 %v1471_v58 }
 0xf0d   : > { %v2630_v59 = vpop.eup %2629 }
 0xf0e   : > { %v1581_v60 = vsel %vm882_vm3, %v2630_v59, 0.0 }
 0xf0f   : > { %1582 = vadd.xlane.f32.xlu0 %v1581_v60 }
 0xf25   : > { %1587 = vrot.lane.b32.xlu0 %v1415_v31, %s3001_s5  ;;  %s3798_s5 = sld [smem:[#allocation37_spill]] }
 0xf94   : > { %v1473_v61 = vpop.xlane.xlu0 %1472 }
 0xf95   : > { %2631 = vrcp.f32 %v1473_v61 }
 0xf9c   : > { %v1583_v62 = vpop.xlane.xlu0 %1582 }
 0xf9d   : > { %2633 = vrcp.f32 %v1583_v62 }
 0xf9f   : > { %v2632_v63 = vpop.eup %2631 }
 0xfa0   : > { %v1475_v0 = vmul.f32 %v2632_v63, %v2628_v32  ;;  %v1588_v1 = vpop.permute.xlu0 %1587 }
 0xfa1   : > { %v1593_v3 = vsel %vm900_vm4, %v1588_v1, 0 }
 0xfa2   : > { %v1476_v2 = vpack.c.bf16 %v1475_v0, %v1475_v0 }
 0xfa4   : > { %2406 = vmatmul.mubr.msk.bf16.vlgmr.msra.gmra.mrb[16].mxu1 %vm882_vm3, %v1476_v2  ;;  %v2264_v2 = vld [vmem:[#allocation16 + $0x1] ss:$0 sm:$0xff] }
 0xfa5   : > { %2416 = vmatpush3.bf16.msra.mxu1 %v1593_v3  ;;  %2417 = vmatprep.mubr.msk.bf16.mxu1 %vm2997_vm1, %v2996_v8 }
 0xfa6   : > { %2429 = vmatprep.subr.bf16.mxu1 %v2996_v8 }
 0xfa7   : > { %v2634_v4 = vpop.eup %2633 }
 0xfa8   : > { %v1585_v5 = vmul.f32 %v2634_v4, %v2630_v59 }
 0xfaa   : > { %v1586_v6 = vpack.c.bf16 %v1585_v5, %v1585_v5 }
 0xfac   : > { %2418 = vmatmul.mubr.msk.bf16.vlgmr.msra.gmra.mrb[20].mxu1 %vm882_vm3, %v1586_v6 }
 0xfad   : > { %2433 = vmatprep.mubr.msk.bf16.mxu1 %vm2997_vm1, %v2996_v8  ;;  %2430 = vmatpush3.bf16.msra.mxu1 %v2603_v36 }
 0xfae   : > { %2431 = vmatprep.subr.bf16.mxu1 %v2996_v8 }
 0xfb1   : > { %2432 = vmatpush3.bf16.msra.mxu1 %v2604_v37 }
 0xfb2   : > { %2449 = vmatprep.subr.bf16.mxu1 %v2996_v8 }
0x1077   : > { %v1519_v10 = vpop.f32.mrb[16].mxu1 }
0x1078   : > { %v2407_v11 = vpop.f32.mrb[17].mxu1 }
0x1079   : > { %v1522_v12 = vpop.f32.mrb[18].mxu1 }
0x107a   : > { %v2408_v13 = vpop.f32.mrb[19].mxu1 }
0x107f   : > { %v1629_v14 = vpop.f32.mrb[20].mxu1 }
0x1080   : > { %1636 = vrot.lane.b32.xlu1 %v1629_v14, %s3003_s18  ;;  %v2419_v15 = vpop.f32.mrb[21].mxu1  ;;  %s3799_s18 = sshll.u32 %s3416_s9, 3 }
0x1081   : > { %v1632_v16 = vpop.f32.mrb[22].mxu1  ;;  %s723_s19 = scalar_lea.vmem [#allocation17], %s3799_s18 }
0x1082   : > { %v2420_v17 = vpop.f32.mrb[23].mxu1  ;;  %v2609_v16 = vld [vmem:[%s3797_s7] sm:$0xff]   ;;  %s2018_s25 = sshll.u32 %s723_s19, 4  ;;  %s3679_s25 = int_to_ptr.vmem [resolvable:$true] %s2018_s25 }
0x1083   : > { %v2610_v17 = vld [vmem:[%s3797_s7 + $0x8] sm:$0xff]   ;;  %s2897_s22 = scalar_lea.vmem %s3679_s25, 128 }
0x1084   : > { %p2898_p6 = scmp.ne.s32.totalorder %s3679_s25, %s2897_s22 }
0x1086   : > { %p2899_p5 = pnand %p2898_p6, %p3801_p11 }
0x1088   : > { %p2900_p9 = pneg %p2899_p5 }
0x10f2   : > { %v1637_v19 = vpop.permute.xlu1 %1636 }
0x10f3   : > { %v1639_v20 = vsel %vm835_vm2, %v1519_v10, %v1637_v19 }
0x10f4   : > { %v1640_v21 = vpack.c.bf16 %v1639_v20, %v1639_v20 }
0x10f6   : > { %2426 = vmatmul.mubr.msk.bf16.vlgmr.msra.gmra.mrb[28].mxu0 %vm728_vm0, %v1640_v21 }
0x10f7   : > { %2445 = vmatprep.mubr.msk.bf16.mxu0 %vm2997_vm1, %v2996_v8  ;;  %2438 = vmatpush3.bf16.msra.mxu0 %v2605_v47 }
0x10f8   : > { %2439 = vmatprep.subr.bf16.mxu0 %v2996_v8 }
0x10fb   : > { %2440 = vmatpush3.bf16.msra.mxu0 %v2606_v48 }
0x10fc   : > { %2441 = vmatprep.subr.bf16.mxu0 %v2996_v8 }
0x10ff   : > { %2442 = vmatpush3.bf16.msra.mxu0 %v2607_v49 }
0x1100   : > { %2443 = vmatprep.subr.bf16.mxu0 %v2996_v8 }
0x1103   : > { %2444 = vmatpush3.bf16.msra.mxu0 %v2608_v50 }
0x11c9   : > { %v1703_v23 = vpop.f32.mrb[28].mxu0 }
0x11ca   : > { %v1704_v25 = vadd.f32 %v2242_v22, %v1703_v23  ;;  %v2427_v26 = vpop.f32.mrb[29].mxu0  ;;  %v2272_v23 = vld [vmem:[%s3795_s20 + $0x1] ss:$0 sm:$0xff] }
0x11cb   : > { %v1706_v27 = vpop.f32.mrb[30].mxu0  ;;  %v2273_v26 = vld [vmem:[%s3796_s26 + $0x1] ss:$0 sm:$0xff] }
0x11cc   : > { %v2428_v28 = vpop.f32.mrb[31].mxu0  ;;  %v1709_v29 = vadd.f32 %v1704_v25, %v3571_v24 }
0x11ce   : > { %v1714_v30 = vsel %vm728_vm0, %v1709_v29, 0.0 }
0x11cf   : > { %1715 = vadd.xlane.f32.xlu1 %v1714_v30 }
0x125c   : > { %v1716_v31 = vpop.xlane.xlu1 %1715 }
0x125d   : > { %v1717_v18 = vmul.f32 0.03125, %v1716_v31 }
0x125f   : > { %v1718_v33 = vsub.f32 %v1709_v29, %v1717_v18  ;;  %v2274_v29 = vld [vmem:[%s3798_s5] ss:$0 sm:$0xff]  ;;  %s2901_s5 = sshll.u32 %s3004_s23, 4  ;;  %s2902_s5 = int_to_ptr.vmem [resolvable:$false] %s2901_s5 }
0x1260   : > { %s2903_s18 = scalar_lea.vmem %s2902_s5, 256  ;;  %p2904_p3 = scmp.lt.s32.totalorder %s3679_s25, %s2902_s5 }
0x1261   : > { %v1719_v34 = vmul.f32 %v1718_v33, %v1718_v33  ;;  %p2905_p7 = scmp.lt.s32.totalorder %s2903_s18, %s2897_s22 }
0x1263   : > { %v1720_v35 = vsel %vm728_vm0, %v1719_v34, 0.0  ;;  %p2906_p12 = por %p2905_p7, %p2904_p3 }
0x1264   : > { %1721 = vadd.xlane.f32.xlu0 %v1720_v35 }
0x1265   : > { %p2907_p8 = pnand %p2906_p12, %p2900_p9 }
0x12f1   : > { %v1722_v24 = vpop.xlane.xlu0 %1721 }
0x12f2   : > { %v1723_v38 = vmul.f32 0.03125, %v1722_v24 }
0x12f4   : > { %v1724_v39 = vadd.f32 1e-12, %v1723_v38 }
0x12f6   : > { %2635 = vrsqrt.f32 %v1724_v39 }
0x1300   : > { %v2636_v40 = vpop.eup %2635 }
0x1301   : > { %v1726_v42 = vmul.f32 %v2636_v40, %v1718_v33 }
0x1303   : > { %v1733_v44 = vmul.f32 %v2246_v41, %v1726_v42 }
0x1305   : > { %v1740_v45 = vadd.f32 %v2247_v43, %v1733_v44 }
0x1307   : > { %v1741_v46 = vpack.c.bf16 %v1740_v45, %v1740_v45 }
0x1309   : > { %2434 = vmatmul.mubr.msk.bf16.vlgmr.msra.gmra.mrb[24].mxu1 %vm728_vm0, %v1741_v46 }
0x130a   : > { %2453 = vmatprep.mubr.msk.bf16.mxu1 %vm2997_vm1, %v2996_v8  ;;  %2450 = vmatpush3.bf16.msra.mxu1 %v2609_v16 }
0x130b   : > { %2451 = vmatprep.subr.bf16.mxu1 %v2996_v8 }
0x130e   : > { %2452 = vmatpush3.bf16.msra.mxu1 %v2610_v17 }
0x13dc   : > { %v1804_v52 = vpop.f32.mrb[24].mxu1 }
0x13dd   : > { %v1805_v53 = vadd.f32 %v2252_v51, %v1804_v52  ;;  %v2435_v54 = vpop.f32.mrb[25].mxu1 }
0x13de   : > { %v1807_v55 = vpop.f32.mrb[26].mxu1 }
0x13df   : > { %v1810_v56 = vmul.f32 %v1805_v53, %v1805_v53  ;;  %v2436_v57 = vpop.f32.mrb[27].mxu1 }
0x13e1   : > { %v1811_v32 = vmul.f32 %v1810_v56, %v1805_v53 }
0x13e3   : > { %v1812_v58 = vmul.f32 0.044715, %v1811_v32 }
0x13e5   : > { %v1813_v59 = vadd.f32 %v1812_v58, %v1805_v53 }
0x13e7   : > { %v1814_v60 = vmul.f32 0.7978846, %v1813_v59 }
0x13e9   : > { %2637 = vtanh.f32 %v1814_v60 }
0x13f3   : > { %v2638_v61 = vpop.eup %2637 }
0x13f4   : > { %v1816_v62 = vadd.f32 1.0, %v2638_v61 }
0x13f6   : > { %v1817_v63 = vmul.f32 0.5, %v1816_v62 }
0x13f8   : > { %v1818_v0 = vmul.f32 %v1817_v63, %v1805_v53 }
0x13fa   : > { %v1819_v1 = vpack.c.bf16 %v1818_v0, %v1818_v0 }
0x13fc   : > { %2446 = vmatmul.mubr.msk.bf16.vlgmr.msra.gmra.mrb[32].mxu0 %vm1272_vm5, %v1819_v1 }
0x14cf   : > { %v1898_v3 = vpop.f32.mrb[32].mxu0 }
0x14d0   : > { %v1899_v4 = vadd.f32 %v2264_v2, %v1898_v3  ;;  %v2447_v5 = vpop.f32.mrb[33].mxu0 }
0x14d1   : > { %v1901_v6 = vpop.f32.mrb[34].mxu0 }
0x14d2   : > { %v2448_v7 = vpop.f32.mrb[35].mxu0  ;;  %v1904_v9 = vadd.f32 %v1899_v4, %v1740_v45 }
0x14d4   : > { %v1909_v10 = vsel %vm728_vm0, %v1904_v9, 0.0 }
0x14d5   : > { %1910 = vadd.xlane.f32.xlu0 %v1909_v10 }
0x1562   : > { %v1911_v11 = vpop.xlane.xlu0 %1910 }
0x1563   : > { %v1912_v12 = vmul.f32 0.03125, %v1911_v11 }
0x1565   : > { %v1913_v13 = vsub.f32 %v1904_v9, %v1912_v12 }
0x1567   : > { %v1914_v14 = vmul.f32 %v1913_v13, %v1913_v13 }
0x1569   : > { %v1915_v15 = vsel %vm728_vm0, %v1914_v14, 0.0 }
0x156a   : > { %1916 = vadd.xlane.f32.xlu1 %v1915_v15 }
0x15f7   : > { %v1917_v19 = vpop.xlane.xlu1 %1916 }
0x15f8   : > { %v1918_v20 = vmul.f32 0.03125, %v1917_v19 }
0x15fa   : > { %v1919_v21 = vadd.f32 1e-12, %v1918_v20 }
0x15fc   : > { %2639 = vrsqrt.f32 %v1919_v21 }
0x1606   : > { %v2640_v22 = vpop.eup %2639 }
0x1607   : > { %v1921_v25 = vmul.f32 %v2640_v22, %v1913_v13 }
0x1609   : > { %v1928_v27 = vmul.f32 %v2272_v23, %v1921_v25 }
0x160b   : > { %v1935_v28 = vadd.f32 %v2273_v26, %v1928_v27 }
0x160d   : > { %v1936_v8 = vpack.c.bf16 %v1935_v28, %v1935_v28 }
0x160f   : > { %2454 = vmatmul.mubr.msk.bf16.vlgmr.msra.gmra.mrb[28].mxu1 %vm728_vm0, %v1936_v8 }
0x16e2   : > { %v1997_v30 = vpop.f32.mrb[28].mxu1 }
0x16e3   : > { %v1998_v31 = vadd.f32 %v2274_v29, %v1997_v30  ;;  %v2455_v18 = vpop.f32.mrb[29].mxu1 }
0x16e4   : > { %v2000_v33 = vpop.f32.mrb[30].mxu1 }
0x16e5   : > { %2003 = vst [vmem:[%s723_s19] sm:$0xff] %v1998_v31  ;;  %v2456_v34 = vpop.f32.mrb[31].mxu1 }
0x16e6   : > { %2910 = shalt.err (!%p2907_p8)
}
0x16e7   : > { %s2911_s9 = scalar_lea.hbm %s3677_s24, 128  ;;  %s2915_s12 = scalar_lea.hbm %s3800_s2, 256 }
0x16e8   : > { %p2912_p10 = scmp.ne.s32.totalorder %s3677_s24, %s2911_s9  ;;  %p2916_p13 = scmp.lt.u32.totalorder %s3677_s24, %s3800_s2 }
0x16e9   : > { %p2917_p0 = scmp.lt.u32.totalorder %s2915_s12, %s2911_s9  ;;  %p2919_p6 = scmp.lt.u32.totalorder %s2911_s9, %s3677_s24 }
0x16ea   : > { %p2913_p4 = pnand %p2912_p10, %p3801_p11 }
0x16eb   : > { %p2918_p2 = por %p2917_p0, %p2916_p13 }
0x16ec   : > { %p2914_p1 = pneg %p2913_p4 }
0x16ed   : > { %p2920_p5 = por %p2919_p6, %p2918_p2 }
0x16ef   : > { %p2921_p9 = pnand %p2920_p5, %p2914_p1 }
0x16f1   : > { %2924 = shalt.err (!%p2921_p9)
}
0x16f2   : > { %2489 = dma.vmem_to_hbm [thread:$0]  (%p3801_p11), %s3679_s25, 128, %s3677_s24, %s2005_s1  }
0x16f3 PF: > { %s2030_s22 = sand.u32 1, %s2971_s27   ;;  %p3802_p3 = scmp.ne.s32.totalorder %s3778_s0, 0 }
0x16f4   : > { %p3803_p7 = scmp.ge.s32.totalorder %s2983_s30, 2  ;;  %s2031_s5 = scalar_lea.sflag [#allocation4], %s2030_s22 }
0x16f6   : > { %p2521_p12 = pnand %p3803_p7, %p3802_p3 }
0x16f8   : > { %2966 = dma.done.wait (!%p2521_p12), %s2031_s5, 128  }
0x16f9   : > { %2968 = vsyncadd (!%p2521_p12), %s2031_s5, 4294967168  ;;  %p37_p8 = scmp.ge.s32.totalorder %s3313_s21, 4   ;;  %s3804_s27 = smov %s2975_s28 }
0x16fa   : > { %s3805_s28 = smov %s2979_s29  ;;  %s3806_s29 = smov %s3325_s16 }
0x16fb   : > { %s3807_s30 = smov %s3313_s21  ;;  %39 = sbr.rel (!%p37_p8) target bundleno = 25 (0x19), region = 190 }
0x1702   :  { %2036 = vsyncpa [#allocation3], 1 }
0x1703   :  { %2038 = vsyncpa [#allocation3 + $0x1], 1 }
0x1704   :  { %2039 = vsyncpa [#allocation6], 1 }
0x1705   :  { %2041 = vsyncpa [#allocation6 + $0x1], 1 }
0x1706   :  { %2042 = vsyncpa [#allocation9], 1 }
0x1707   :  { %2043 = vsyncpa [#allocation12], 1 }
0x1708   :  { %2044 = vsyncpa [#allocation15], 1 }
0x1709   :  { %2045 = vsyncpa [#allocation4], 1 }
0x170a   :  { %2047 = vsyncpa [#allocation4 + $0x1], 1 }

</bundles_post_ra>
